<compile_context>
chip_gen: v7x
topology: tpu7x:2x2x1
jax: 0.10.0
libtpu: 0.0.40
codegen_flags: <defaults>
</compile_context>

<pallas_src>
import jax
import jax.numpy as jnp
from jax.experimental import pallas as pl
from jax.experimental.pallas import tpu as pltpu

H = W = 32            # spatial size fixed by Linear(4*32*32, 1)
HW = H * W
C_FEAT = 6            # C_out of the depth-model feature (must be divisible by 3)
C_RED = 3             # SE-block bottleneck width
C_GROUP = C_FEAT // 3


def cls_head_kernel(x_ref, d_ref, wbf_ref, lw0_ref, w1t_ref, w2t_ref,
                    const_ref, out_ref):
    C = w1t_ref.shape[0]

    # (1) One fused MXU contraction per step: for every batch row,
    #     cols [0,C)  -> pooled (SE squeeze means),  cols [C,2C) -> r = <feat, ws>.
    m = jnp.dot(x_ref[...], wbf_ref[...],
                preferred_element_type=jnp.float32)            # (NB, 2C) f32
    pooled = m[:, :C]                                          # (NB, C)
    r = m[:, C:]                                               # (NB, C)

    # (2) SE excitation MLP (C -> 3 -> C): tiny MXU dots, sigmoid on the EUP.
    z = jnp.maximum(
        jnp.dot(pooled, w1t_ref[...], preferred_element_type=jnp.float32), 0.0)
    e_lin = jnp.dot(z, w2t_ref[...], preferred_element_type=jnp.float32)
    e = 1.0 / (1.0 + jnp.exp(-e_lin))                          # (NB, C)

    # (3) Depth-channel linear term (tiny MXU dot).
    dterm = jnp.dot(d_ref[...], lw0_ref[...],
                    preferred_element_type=jnp.float32)        # (NB, 1)

    # (4) Combine: er[b] = sum_c e[b,c] * r[b,c]  (narrow 6-lane reduce), sigmoid.
    er = jnp.sum(e * r, axis=-1, keepdims=True)                # (NB, 1)
    pre = dterm + er + const_ref[0]
    out_ref[...] = 1.0 / (1.0 + jnp.exp(-pre))                 # (NB, 1)


def _fold_head_weights(params, C):
    """Fold (grouped 3x3 conv, pad=1) o flatten o Linear into per-channel maps.

    Parameter-only preprocessing (no per-input work):
      ws    : (C, HW)  ws[ch][h,w] = sum_{kh,kw} conv_w[g,i,kh,kw]*lw[g+1,h-(kh-1),w-(kw-1)]
      lw0   : (HW,)    linear weights of the depth channel
      const : (1,)     lin_b + sum_g conv_b[g] * sum(lin_w[g+1])
    """
    lw = params["lin_w"].reshape(4, H, W).astype(jnp.float32)    # nn.Flatten(1) is channel-major
    conv_w = params["conv_w"].astype(jnp.float32)                # (3, C//3, 3, 3)

    lw_pad = jnp.pad(lw[1:], ((0, 0), (1, 1), (1, 1)))           # (3, 34, 34), zero border
    # shifts[g, kh, kw, h, w] = lw[g+1, h-(kh-1), w-(kw-1)]  (zero outside the image)
    shifts = jnp.stack(
        [jnp.stack([lw_pad[:, 2 - kh:2 - kh + H, 2 - kw:2 - kw + W]
                    for kw in range(3)], axis=1)
         for kh in range(3)], axis=1)                            # (3, 3, 3, H, W)
    ws = jnp.einsum("gikl,gklhw->gihw", conv_w, shifts).reshape(C, HW)

    lw0 = lw[0].reshape(HW)
    const = (params["lin_b"][0]
             + jnp.sum(params["conv_b"] * jnp.sum(lw[1:], axis=(1, 2))))
    return ws, lw0, jnp.reshape(const, (1,)).astype(jnp.float32)


def _build_head_operands(params, C):
    """Build the fused contraction matrix + small SE / depth weights (params-only)."""
    ws, lw0, const = _fold_head_weights(params, C)
    K = C * HW
    # Column layout of the fused contraction matrix WBF (K, 2C):
    #   cols [0, C)  : per-channel mean indicator (1/1024 on that channel's rows)
    #   cols [C, 2C) : folded conv∘linear map for that channel
    wbf = jnp.zeros((K, 2 * C), jnp.float32)
    for c in range(C):
        sl = slice(c * HW, (c + 1) * HW)
        wbf = wbf.at[sl, c].set(1.0 / HW)
        wbf = wbf.at[sl, C + c].set(ws[c])
    wbf = wbf.astype(jnp.bfloat16)                 # matches bf16 feature DMA (MXU-native)

    lw0col = lw0.reshape(HW, 1)                    # f32 (depth term kept in f32)
    w1t = params["se_w1"].T.astype(jnp.float32)    # (C, C_RED)
    w2t = params["se_w2"].T.astype(jnp.float32)    # (C_RED, C)
    return wbf, lw0col, w1t, w2t, const


def _pick_block_rows(B):
    """Batch rows per grid step: large blocks, >=2 grid steps (megacore) when B allows."""
    if B <= 16:
        return B                                    # single full block (always a legal block)
    nb = 8 * ((B // 2) // 8)                        # largest multiple of 8 <= B/2
    return max(8, min(128, nb))


def cls_head(feature, depth, params):
    B, C = feature.shape[0], feature.shape[1]
    assert C % 3 == 0, "Conv2d_X(groups=3) requires C divisible by 3"
    assert feature.shape[2] == H and feature.shape[3] == W
    assert params["lin_w"].shape == (1, 4 * HW)     # channel-major flatten order assumed

    wbf, lw0col, w1t, w2t, const = _build_head_operands(params, C)

    # Free contiguous reshapes (no pad / transpose copies of the big operand).
    # bf16 DMA of the dominant operand per the review; the convert fuses into the
    # producer fusion under jit (free when the backbone already emits bf16).
    x = feature.reshape(B, C * HW).astype(jnp.bfloat16)
    d = depth.reshape(B, HW).astype(jnp.float32)    # no-op cast when already f32

    NB = _pick_block_rows(B)
    grid = (pl.cdiv(B, NB),)                        # uneven last block handled by masking

    out = pl.pallas_call(
        cls_head_kernel,
        out_shape=jax.ShapeDtypeStruct((B, 1), jnp.float32),
        grid=grid,
        in_specs=[
            pl.BlockSpec((NB, C * HW), lambda g: (g, 0)),       # feature rows (bf16)
            pl.BlockSpec((NB, HW), lambda g: (g, 0)),           # depth rows (f32)
            pl.BlockSpec((C * HW, 2 * C), lambda g: (0, 0)),    # fused [mean | ws] matrix
            pl.BlockSpec((HW, 1), lambda g: (0, 0)),            # depth-channel linear weights
            pl.BlockSpec((C, C_RED), lambda g: (0, 0)),         # SE fc1^T
            pl.BlockSpec((C_RED, C), lambda g: (0, 0)),         # SE fc2^T
            pl.BlockSpec(memory_space=pltpu.MemorySpace.SMEM),  # scalar bias constant
        ],
        out_specs=pl.BlockSpec((NB, 1), lambda g: (g, 0)),
        compiler_params=pltpu.CompilerParams(
            dimension_semantics=("parallel",)),                 # megacore on v7x (grid >= 2)
    )(x, d, wbf, lw0col, w1t, w2t, const)
    return out


def depth_model_stub(x, proj):
    # TODO(synk): CDCNv2 not provided; deterministic stand-in with the shapes forward() implies.
    B, Cin, Hx, Wx = x.shape
    fh, fw = Hx // H, Wx // W
    pooled = x.reshape(B, Cin, H, fh, W, fw).mean(axis=(3, 5))   # (B, 3, 32, 32)
    depth = pooled.mean(axis=1)                                  # (B, 32, 32)
    feature = jnp.einsum("bchw,cd->bdhw", pooled, proj)          # (B, C_FEAT, 32, 32)
    return depth, feature


def finetune_forward(x, params):
    depth, feature = depth_model_stub(x, params["proj"])
    out = cls_head(feature, depth, params)
    return depth, out, feature


def cls_head_reference(feature, depth, params):
    """Pure-JAX reference of the cls head (for correctness check only)."""
    B = feature.shape[0]
    pooled = feature.mean(axis=(2, 3))                                   # (B, C)
    z = jnp.maximum(pooled @ params["se_w1"].T, 0.0)
    e = jax.nn.sigmoid(z @ params["se_w2"].T)
    scaled = feature * e[:, :, None, None]
    conv = jax.lax.conv_general_dilated(
        scaled, params["conv_w"], window_strides=(1, 1), padding="SAME",
        feature_group_count=3, dimension_numbers=("NCHW", "OIHW", "NCHW"))
    conv = conv + params["conv_b"][None, :, None, None]
    cat = jnp.concatenate([depth[:, None], conv], axis=1)                # (B, 4, 32, 32)
    flat = cat.reshape(B, -1)
    return jax.nn.sigmoid(flat @ params["lin_w"].T + params["lin_b"][None, :])


if __name__ == "__main__":
    key = jax.random.PRNGKey(0)
    ks = jax.random.split(key, 10)

    params = {
        "proj":   0.1 * jax.random.normal(ks[1], (3, C_FEAT), jnp.float32),
        "se_w1":  0.1 * jax.random.normal(ks[2], (C_RED, C_FEAT), jnp.float32),
        "se_w2":  0.1 * jax.random.normal(ks[3], (C_FEAT, C_RED), jnp.float32),
        "conv_w": 0.1 * jax.random.normal(ks[4], (3, C_GROUP, 3, 3), jnp.float32),
        "conv_b": 0.1 * jax.random.normal(ks[5], (3,), jnp.float32),
        "lin_w":  0.01 * jax.random.normal(ks[6], (1, 4 * HW), jnp.float32),
        "lin_b":  jnp.zeros((1,), jnp.float32),
    }

    # --- Case 1: full forward at a small batch (single full-block grid step).
    B = 4
    x = jax.random.normal(ks[0], (B, 3, 64, 64), jnp.float32)
    fwd = jax.jit(finetune_forward)
    depth, out, feature = fwd(x, params)
    jax.block_until_ready((depth, out, feature))

    assert depth.shape == (B, H, W)
    assert out.shape == (B, 1)
    assert feature.shape == (B, C_FEAT, H, W)

    ref = cls_head_reference(feature, depth, params)
    assert jnp.allclose(out, ref, rtol=2e-2, atol=2e-3), (out, ref)

    # --- Case 2: larger batch hitting the multi-step grid + uneven boundary block.
    B2 = 44                                      # NB=16 -> grid of 3, partial last block
    feature2 = jax.random.normal(ks[8], (B2, C_FEAT, H, W), jnp.float32)
    depth2 = jax.random.normal(ks[9], (B2, H, W), jnp.float32)
    out2 = jax.jit(cls_head)(feature2, depth2, params)
    jax.block_until_ready(out2)
    assert out2.shape == (B2, 1)
    ref2 = cls_head_reference(feature2, depth2, params)
    assert jnp.allclose(out2, ref2, rtol=2e-2, atol=2e-3), (out2, ref2)

    print("KERNEL_OK")
</pallas_src>

<mosaic_0001>
module attributes {stable_mosaic.version = 11 : i64} {
  func.func @cls_head_kernel(%arg0: i32, %arg1: memref<4x6144xbf16, #tpu.memory_space<vmem>>, %arg2: memref<4x1024xf32, #tpu.memory_space<vmem>>, %arg3: memref<6144x12xbf16, #tpu.memory_space<vmem>>, %arg4: memref<1024x1xf32, #tpu.memory_space<vmem>>, %arg5: memref<6x3xf32, #tpu.memory_space<vmem>>, %arg6: memref<3x6xf32, #tpu.memory_space<vmem>>, %arg7: memref<1xf32, #tpu.memory_space<smem>>, %arg8: memref<4x1xf32, #tpu.memory_space<vmem>>) attributes {dimension_semantics = [#tpu.dimension_semantics<parallel>], iteration_bounds = array<i64: 1>, scalar_prefetch = 0 : i64, scratch_operands = 0 : i64, tpu.core_type = #tpu.core_type<tc>, window_params = [{transform_indices = @transform_0, window_bounds = array<i64: 4, 6144>}, {transform_indices = @transform_1, window_bounds = array<i64: 4, 1024>}, {pipeline_mode = #tpu.pipeline_mode<synchronous>, transform_indices = @transform_2, window_bounds = array<i64: 6144, 12>}, {pipeline_mode = #tpu.pipeline_mode<synchronous>, transform_indices = @transform_3, window_bounds = array<i64: 1024, 1>}, {pipeline_mode = #tpu.pipeline_mode<synchronous>, transform_indices = @transform_4, window_bounds = array<i64: 6, 3>}, {pipeline_mode = #tpu.pipeline_mode<synchronous>, transform_indices = @transform_5, window_bounds = array<i64: 3, 6>}, {transform_indices = @transform_6, window_bounds = array<i64: 1>}, {transform_indices = @transform_7, window_bounds = array<i64: 4, 1>}]} {
    %c0 = arith.constant 0 : index
    %c0_0 = arith.constant 0 : index
    %0 = vector.load %arg1[%c0, %c0_0] : memref<4x6144xbf16, #tpu.memory_space<vmem>>, vector<4x6144xbf16>
    %c0_1 = arith.constant 0 : index
    %c0_2 = arith.constant 0 : index
    %1 = vector.load %arg3[%c0_1, %c0_2] : memref<6144x12xbf16, #tpu.memory_space<vmem>>, vector<6144x12xbf16>
    %cst = arith.constant dense<0.000000e+00> : vector<4x12xf32>
    %2 = tpu.matmul %0, %1, %cst {dimension_numbers = #tpu.dot_dimension_numbers<[1], [0], [0], [1], [0, 0, 1, 1], [], []>} : vector<4x6144xbf16>, vector<6144x12xbf16>, vector<4x12xf32> -> vector<4x12xf32>
    %3 = vector.extract_strided_slice %2 {offsets = [0, 0], sizes = [4, 6], strides = [1, 1]} : vector<4x12xf32> to vector<4x6xf32>
    %4 = vector.extract_strided_slice %2 {offsets = [0, 6], sizes = [4, 6], strides = [1, 1]} : vector<4x12xf32> to vector<4x6xf32>
    %c0_3 = arith.constant 0 : index
    %c0_4 = arith.constant 0 : index
    %5 = vector.load %arg5[%c0_3, %c0_4] : memref<6x3xf32, #tpu.memory_space<vmem>>, vector<6x3xf32>
    %cst_5 = arith.constant dense<0.000000e+00> : vector<4x3xf32>
    %6 = tpu.matmul %3, %5, %cst_5 {dimension_numbers = #tpu.dot_dimension_numbers<[1], [0], [0], [1], [0, 0, 1, 1], [], []>} : vector<4x6xf32>, vector<6x3xf32>, vector<4x3xf32> -> vector<4x3xf32>
    %cst_6 = arith.constant 0.000000e+00 : f32
    %7 = vector.broadcast %cst_6 : f32 to vector<4x3xf32>
    %8 = arith.maximumf %6, %7 : vector<4x3xf32>
    %c0_7 = arith.constant 0 : index
    %c0_8 = arith.constant 0 : index
    %9 = vector.load %arg6[%c0_7, %c0_8] : memref<3x6xf32, #tpu.memory_space<vmem>>, vector<3x6xf32>
    %cst_9 = arith.constant dense<0.000000e+00> : vector<4x6xf32>
    %10 = tpu.matmul %8, %9, %cst_9 {dimension_numbers = #tpu.dot_dimension_numbers<[1], [0], [0], [1], [0, 0, 1, 1], [], []>} : vector<4x3xf32>, vector<3x6xf32>, vector<4x6xf32> -> vector<4x6xf32>
    %cst_10 = arith.constant 0.000000e+00 : f32
    %11 = vector.broadcast %cst_10 : f32 to vector<4x6xf32>
    %12 = arith.subf %11, %10 : vector<4x6xf32>
    %13 = math.exp %12 : vector<4x6xf32>
    %cst_11 = arith.constant 1.000000e+00 : f32
    %14 = vector.broadcast %cst_11 : f32 to vector<4x6xf32>
    %15 = arith.addf %14, %13 : vector<4x6xf32>
    %cst_12 = arith.constant 1.000000e+00 : f32
    %16 = vector.broadcast %cst_12 : f32 to vector<4x6xf32>
    %17 = arith.divf %16, %15 : vector<4x6xf32>
    %c0_13 = arith.constant 0 : index
    %c0_14 = arith.constant 0 : index
    %18 = vector.load %arg2[%c0_13, %c0_14] : memref<4x1024xf32, #tpu.memory_space<vmem>>, vector<4x1024xf32>
    %c0_15 = arith.constant 0 : index
    %c0_16 = arith.constant 0 : index
    %19 = vector.load %arg4[%c0_15, %c0_16] : memref<1024x1xf32, #tpu.memory_space<vmem>>, vector<1024x1xf32>
    %cst_17 = arith.constant dense<0.000000e+00> : vector<4x1xf32>
    %20 = tpu.matmul %18, %19, %cst_17 {dimension_numbers = #tpu.dot_dimension_numbers<[1], [0], [0], [1], [0, 0, 1, 1], [], []>} : vector<4x1024xf32>, vector<1024x1xf32>, vector<4x1xf32> -> vector<4x1xf32>
    %21 = arith.mulf %17, %4 : vector<4x6xf32>
    %cst_18 = arith.constant dense<0.000000e+00> : vector<4xf32>
    %22 = vector.multi_reduction <add>, %21, %cst_18 [1] : vector<4x6xf32> to vector<4xf32>
    %23 = vector.shape_cast %22 : vector<4xf32> to vector<4x1xf32>
    %24 = arith.addf %20, %23 : vector<4x1xf32>
    %c0_19 = arith.constant 0 : index
    %25 = memref.load %arg7[%c0_19] : memref<1xf32, #tpu.memory_space<smem>>
    %26 = vector.broadcast %25 : f32 to vector<4x1xf32>
    %27 = arith.addf %24, %26 : vector<4x1xf32>
    %cst_20 = arith.constant 0.000000e+00 : f32
    %28 = vector.broadcast %cst_20 : f32 to vector<4x1xf32>
    %29 = arith.subf %28, %27 : vector<4x1xf32>
    %30 = math.exp %29 : vector<4x1xf32>
    %cst_21 = arith.constant 1.000000e+00 : f32
    %31 = vector.broadcast %cst_21 : f32 to vector<4x1xf32>
    %32 = arith.addf %31, %30 : vector<4x1xf32>
    %cst_22 = arith.constant 1.000000e+00 : f32
    %33 = vector.broadcast %cst_22 : f32 to vector<4x1xf32>
    %34 = arith.divf %33, %32 : vector<4x1xf32>
    %c0_23 = arith.constant 0 : index
    %c0_24 = arith.constant 0 : index
    %35 = vector.load %arg8[%c0_23, %c0_24] : memref<4x1xf32, #tpu.memory_space<vmem>>, vector<4x1xf32>
    tpu.vector_store %arg8[%c0_23, %c0_24], %34 {strides = array<i32>} : memref<4x1xf32, #tpu.memory_space<vmem>>, vector<4x1xf32>,
    return
  }
  func.func @transform_0(%arg0: i32) -> (i32, i32) {
    %c0_i32 = arith.constant 0 : i32
    %c0_i32_0 = arith.constant 0 : i32
    return %arg0, %c0_i32 : i32, i32
  }
  func.func @transform_1(%arg0: i32) -> (i32, i32) {
    %c0_i32 = arith.constant 0 : i32
    %c0_i32_0 = arith.constant 0 : i32
    return %arg0, %c0_i32 : i32, i32
  }
  func.func @transform_2(%arg0: i32) -> (i32, i32) {
    %c0_i32 = arith.constant 0 : i32
    %c0_i32_0 = arith.constant 0 : i32
    %c0_i32_1 = arith.constant 0 : i32
    return %c0_i32, %c0_i32_0 : i32, i32
  }
  func.func @transform_3(%arg0: i32) -> (i32, i32) {
    %c0_i32 = arith.constant 0 : i32
    %c0_i32_0 = arith.constant 0 : i32
    %c0_i32_1 = arith.constant 0 : i32
    return %c0_i32, %c0_i32_0 : i32, i32
  }
  func.func @transform_4(%arg0: i32) -> (i32, i32) {
    %c0_i32 = arith.constant 0 : i32
    %c0_i32_0 = arith.constant 0 : i32
    %c0_i32_1 = arith.constant 0 : i32
    return %c0_i32, %c0_i32_0 : i32, i32
  }
  func.func @transform_5(%arg0: i32) -> (i32, i32) {
    %c0_i32 = arith.constant 0 : i32
    %c0_i32_0 = arith.constant 0 : i32
    %c0_i32_1 = arith.constant 0 : i32
    return %c0_i32, %c0_i32_0 : i32, i32
  }
  func.func @transform_6(%arg0: i32) -> i32 {
    %c0_i32 = arith.constant 0 : i32
    %c0_i32_0 = arith.constant 0 : i32
    return %c0_i32 : i32
  }
  func.func @transform_7(%arg0: i32) -> (i32, i32) {
    %c0_i32 = arith.constant 0 : i32
    %c0_i32_0 = arith.constant 0 : i32
    return %arg0, %c0_i32 : i32, i32
  }
}

</mosaic_0001>

<bundles_post_ra>
// kernel: finetune_forward.1
= control target key start
LH: loop header
LB: loop body
LE: loop exit
PB: predicated region body
PF: predicated region fallthrough
CT: control target
= control target key end

     0   :  { %v6558_v22 = vmov 1983009808   ;;  %v824_v24 = vlaneseq  ;;  %vm4341_vm0 = vcmask 1045504   ;;  %vm6560_vm1 = vmmov 0   ;;  %s6561_s12 = smov 122   ;;  %s8246_s2 = inlined_call_operand.vmem [shape: bf16[6144,12], index: 2, kind: input, shape index: {}]   ;;  %s8247_s0 = inlined_call_operand.vmem [shape: bf16[4,6144], index: 0, kind: input, shape index: {}]   ;;  %s8248_s4 = inlined_call_operand.vmem [shape: f32[6,3], index: 4, kind: input, shape index: {}]   ;;  %s8249_s5 = inlined_call_operand.vmem [shape: f32[3,6], index: 5, kind: input, shape index: {}]   ;;  %s8250_s3 = inlined_call_operand.vmem [shape: f32[1024,1], index: 3, kind: input, shape index: {}]   ;;  %s8251_s1 = inlined_call_operand.vmem [shape: f32[4,1024], index: 1, kind: input, shape index: {}]   ;;  %s8252_s6 = inlined_call_operand.<no memory space> [shape: f32[1], index: 6, kind: input, shape index: {}]   ;;  %s8253_s7 = inlined_call_operand.vmem [shape: f32[4,1], index: 7, kind: output, shape index: {}]  }
   0x1   :  { %v6150_v0 = vld [vmem:[%s8246_s2 + $0x40] sm:$0xff]   ;;  %v6154_v4 = vld [vmem:[%s8246_s2 + $0x48] sm:$0xff]   ;;  %v6158_v8 = vld [vmem:[%s8246_s2 + $0x50] sm:$0xff]   ;;  %v822_v23 = vunpack.c.l.s4 %v6558_v22  ;;  %vm4421_vm2 = vcmask 1042432   ;;  %vm4337_vm3 = vcmask 48128   ;;  %vm4417_vm4 = vcmask 23552  }
   0x2   :  { %v6151_v1 = vld [vmem:[%s8246_s2 + $0xc0] sm:$0xff]   ;;  %5336 = vmatprep.subr.bf16.mxu0 %v6150_v0  ;;  %v6155_v5 = vld [vmem:[%s8246_s2 + $0xc8] sm:$0xff]   ;;  %v6159_v9 = vld [vmem:[%s8246_s2 + $0xd0] sm:$0xff]   ;;  %v825_v30 = vshrl.u32 %v824_v24, 7  ;;  %vm4637_vm5 = vcmask 44032   ;;  %vm4942_vm6 = vcmask 3072  }
   0x3   :  { %v6152_v2 = vld [vmem:[%s8246_s2] sm:$0xff]   ;;  %5358 = vmatprep.subr.bf16.mxu1 %v6151_v1  ;;  %v6156_v6 = vld [vmem:[%s8246_s2 + $0x8] sm:$0xff]   ;;  %v6160_v10 = vld [vmem:[%s8246_s2 + $0x10] sm:$0xff]   ;;  %v823_v29 = vunpack.c.0.s8 %v822_v23 }
   0x4   :  { %v6153_v3 = vld [vmem:[%s8246_s2 + $0x80] sm:$0xff]   ;;  %5337 = vmatpush3.bf16.msra.mxu0 %v6152_v2  ;;  %v6157_v7 = vld [vmem:[%s8246_s2 + $0x88] sm:$0xff]   ;;  %v6161_v11 = vld [vmem:[%s8246_s2 + $0x90] sm:$0xff]  }
   0x5   :  { %5359 = vmatpush3.bf16.msra.mxu1 %v6153_v3  ;;  %5338 = vmatprep.subr.bf16.mxu0 %v6154_v4  ;;  %v6162_v12 = vld [vmem:[%s8246_s2 + $0x58] sm:$0xff]   ;;  %v6166_v16 = vld [vmem:[%s8246_s2 + $0x60] sm:$0xff]   ;;  %v6170_v20 = vld [vmem:[%s8246_s2 + $0x68] sm:$0xff]   ;;  %v6692_v35 = vsub.s32 %v823_v29, %v825_v30 }
   0x6   :  { %5360 = vmatprep.subr.bf16.mxu1 %v6155_v5  ;;  %v6163_v13 = vld [vmem:[%s8246_s2 + $0xd8] sm:$0xff]   ;;  %v6167_v17 = vld [vmem:[%s8246_s2 + $0xe0] sm:$0xff]   ;;  %v6171_v21 = vld [vmem:[%s8246_s2 + $0xe8] sm:$0xff]  }
   0x7   :  { %v6164_v14 = vld [vmem:[%s8246_s2 + $0x18] sm:$0xff]   ;;  %v6168_v18 = vld [vmem:[%s8246_s2 + $0x20] sm:$0xff]   ;;  %v6172_v25 = vld [vmem:[%s8246_s2 + $0x28] sm:$0xff]  }
   0x8   :  { %5339 = vmatpush3.bf16.msra.mxu0 %v6156_v6  ;;  %v6165_v15 = vld [vmem:[%s8246_s2 + $0x98] sm:$0xff]   ;;  %v6169_v19 = vld [vmem:[%s8246_s2 + $0xa0] sm:$0xff]   ;;  %v6173_v26 = vld [vmem:[%s8246_s2 + $0xa8] sm:$0xff]  }
   0x9   :  { %5361 = vmatpush3.bf16.msra.mxu1 %v6157_v7  ;;  %5340 = vmatprep.subr.bf16.mxu0 %v6158_v8  ;;  %v6174_v27 = vld [vmem:[%s8246_s2 + $0x70] sm:$0xff]   ;;  %v6178_v33 = vld [vmem:[%s8246_s2 + $0x78] sm:$0xff]   ;;  %v28_v38 = vld [vmem:[%s8247_s0] sm:$0xff] }
   0xa   :  { %5362 = vmatprep.subr.bf16.mxu1 %v6159_v9  ;;  %v6175_v28 = vld [vmem:[%s8246_s2 + $0xf0] sm:$0xff]   ;;  %v6179_v34 = vld [vmem:[%s8246_s2 + $0xf8] sm:$0xff]   ;;  %v827_v39 = vrot.slane %v28_v38, %v6692_v35  ;;  %v820_v40 = vcombine.high %v28_v38, %v28_v38  ;;  %v6183_v41 = vld [vmem:[%s8246_s2 + $0x140] sm:$0xff]  }
   0xb   :  { %v6176_v31 = vld [vmem:[%s8246_s2 + $0x30] sm:$0xff]   ;;  %v6180_v36 = vld [vmem:[%s8246_s2 + $0x38] sm:$0xff]   ;;  %v6184_v42 = vld [vmem:[%s8246_s2 + $0x1c0] sm:$0xff]  }
   0xc   :  { %5341 = vmatpush3.bf16.msra.mxu0 %v6160_v10  ;;  %v6177_v32 = vld [vmem:[%s8246_s2 + $0xb0] sm:$0xff]   ;;  %v6181_v37 = vld [vmem:[%s8246_s2 + $0xb8] sm:$0xff]   ;;  %v835_v43 = vcombine.high %v827_v39, %v827_v39  ;;  %v834_v44 = vrot.slane %v820_v40, %v6692_v35  ;;  %v6185_v45 = vld [vmem:[%s8246_s2 + $0x100] sm:$0xff]  }
   0xd   :  { %5363 = vmatpush3.bf16.msra.mxu1 %v6161_v11  ;;  %5342 = vmatprep.subr.bf16.mxu0 %v6162_v12  ;;  %v6186_v46 = vld [vmem:[%s8246_s2 + $0x180] sm:$0xff]   ;;  %v6187_v48 = vld [vmem:[%s8246_s2 + $0x148] sm:$0xff]   ;;  %v6191_v52 = vld [vmem:[%s8246_s2 + $0x150] sm:$0xff]  }
   0xe   :  { %5364 = vmatprep.subr.bf16.mxu1 %v6163_v13  ;;  %3408 = vmatprep.mubr.bf16.mxu0 %v835_v43  ;;  %v836_v47 = vcombine.high %v834_v44, %v834_v44  ;;  %v6188_v49 = vld [vmem:[%s8246_s2 + $0x1c8] sm:$0xff]   ;;  %v6192_v53 = vld [vmem:[%s8246_s2 + $0x1d0] sm:$0xff]   ;;  %v6195_v56 = vld [vmem:[%s8246_s2 + $0x158] sm:$0xff]  }
   0xf   :  { %v6189_v50 = vld [vmem:[%s8246_s2 + $0x108] sm:$0xff]   ;;  %v6193_v54 = vld [vmem:[%s8246_s2 + $0x110] sm:$0xff]   ;;  %v6196_v57 = vld [vmem:[%s8246_s2 + $0x1d8] sm:$0xff]  }
  0x10   :  { %5343 = vmatpush3.bf16.msra.mxu0 %v6164_v14  ;;  %3448 = vmatprep.mubr.bf16.mxu1 %v836_v47  ;;  %v6190_v51 = vld [vmem:[%s8246_s2 + $0x188] sm:$0xff]   ;;  %v6194_v55 = vld [vmem:[%s8246_s2 + $0x190] sm:$0xff]   ;;  %v6197_v58 = vld [vmem:[%s8246_s2 + $0x118] sm:$0xff]  }
  0x11   :  { %5365 = vmatpush3.bf16.msra.mxu1 %v6165_v15  ;;  %5344 = vmatprep.subr.bf16.mxu0 %v6166_v16  ;;  %v6198_v59 = vld [vmem:[%s8246_s2 + $0x198] sm:$0xff]   ;;  %v6199_v60 = vld [vmem:[%s8246_s2 + $0x160] sm:$0xff]   ;;  %v6203_v0 = vld [vmem:[%s8246_s2 + $0x168] sm:$0xff]  }
  0x12   :  { %5366 = vmatprep.subr.bf16.mxu1 %v6167_v17  ;;  %v6200_v61 = vld [vmem:[%s8246_s2 + $0x1e0] sm:$0xff]   ;;  %v6204_v1 = vld [vmem:[%s8246_s2 + $0x1e8] sm:$0xff]   ;;  %v6207_v4 = vld [vmem:[%s8246_s2 + $0x170] sm:$0xff]  }
  0x13   :  { %v6201_v62 = vld [vmem:[%s8246_s2 + $0x120] sm:$0xff]   ;;  %v6205_v2 = vld [vmem:[%s8246_s2 + $0x128] sm:$0xff]   ;;  %v6208_v5 = vld [vmem:[%s8246_s2 + $0x1f0] sm:$0xff]  }
  0x14   :  { %5345 = vmatpush3.bf16.msra.mxu0 %v6168_v18  ;;  %v6202_v63 = vld [vmem:[%s8246_s2 + $0x1a0] sm:$0xff]   ;;  %v6206_v3 = vld [vmem:[%s8246_s2 + $0x1a8] sm:$0xff]   ;;  %v6209_v6 = vld [vmem:[%s8246_s2 + $0x130] sm:$0xff]  }
  0x15   :  { %5367 = vmatpush3.bf16.msra.mxu1 %v6169_v19  ;;  %5346 = vmatprep.subr.bf16.mxu0 %v6170_v20  ;;  %v6210_v7 = vld [vmem:[%s8246_s2 + $0x1b0] sm:$0xff]   ;;  %v6211_v8 = vld [vmem:[%s8246_s2 + $0x178] sm:$0xff]   ;;  %v29_v12 = vld [vmem:[%s8247_s0 + $0x8] sm:$0xff] }
  0x16   :  { %5368 = vmatprep.subr.bf16.mxu1 %v6171_v21  ;;  %v6212_v9 = vld [vmem:[%s8246_s2 + $0x1f8] sm:$0xff]   ;;  %v844_v13 = vrot.slane %v29_v12, %v6692_v35  ;;  %v837_v14 = vcombine.high %v29_v12, %v29_v12  ;;  %v6216_v15 = vld [vmem:[%s8246_s2 + $0x240] sm:$0xff]   ;;  %v6220_v22 = vld [vmem:[%s8246_s2 + $0x248] sm:$0xff]  }
  0x17   :  { %v6213_v10 = vld [vmem:[%s8246_s2 + $0x138] sm:$0xff]   ;;  %v6217_v16 = vld [vmem:[%s8246_s2 + $0x2c0] sm:$0xff]   ;;  %v6221_v23 = vld [vmem:[%s8246_s2 + $0x2c8] sm:$0xff]  }
  0x18   :  { %5347 = vmatpush3.bf16.msra.mxu0 %v6172_v25  ;;  %v6214_v11 = vld [vmem:[%s8246_s2 + $0x1b8] sm:$0xff]   ;;  %v852_v17 = vcombine.high %v844_v13, %v844_v13  ;;  %v851_v18 = vrot.slane %v837_v14, %v6692_v35  ;;  %v6218_v19 = vld [vmem:[%s8246_s2 + $0x200] sm:$0xff]   ;;  %v6222_v24 = vld [vmem:[%s8246_s2 + $0x208] sm:$0xff]  }
  0x19   :  { %5369 = vmatpush3.bf16.msra.mxu1 %v6173_v26  ;;  %5348 = vmatprep.subr.bf16.mxu0 %v6174_v27  ;;  %v6219_v20 = vld [vmem:[%s8246_s2 + $0x280] sm:$0xff]   ;;  %v6223_v25 = vld [vmem:[%s8246_s2 + $0x288] sm:$0xff]   ;;  %v6224_v26 = vld [vmem:[%s8246_s2 + $0x250] sm:$0xff]  }
  0x1a   :  { %5370 = vmatprep.subr.bf16.mxu1 %v6175_v28  ;;  %v853_v21 = vcombine.high %v851_v18, %v851_v18  ;;  %v6225_v27 = vld [vmem:[%s8246_s2 + $0x2d0] sm:$0xff]   ;;  %v6228_v30 = vld [vmem:[%s8246_s2 + $0x258] sm:$0xff]   ;;  %v6235_v38 = vld [vmem:[%s8246_s2 + $0x2a0] sm:$0xff]  }
  0x1b   :  { %v6226_v28 = vld [vmem:[%s8246_s2 + $0x210] sm:$0xff]   ;;  %v6237_v40 = vld [vmem:[%s8246_s2 + $0x2e8] sm:$0xff]   ;;  %v6244_v47 = vld [vmem:[%s8246_s2 + $0x278] sm:$0xff]  }
  0x1c   :  { %5349 = vmatpush3.bf16.msra.mxu0 %v6176_v31  ;;  %v6227_v29 = vld [vmem:[%s8246_s2 + $0x290] sm:$0xff]   ;;  %v6229_v31 = vld [vmem:[%s8246_s2 + $0x2d8] sm:$0xff]   ;;  %v6268_v12 = vld [vmem:[%s8246_s2 + $0x3a0] sm:$0xff]  }
  0x1d   :  { %5371 = vmatpush3.bf16.msra.mxu1 %v6177_v32  ;;  %5350 = vmatprep.subr.bf16.mxu0 %v6178_v33  ;;  %v6230_v32 = vld [vmem:[%s8246_s2 + $0x218] sm:$0xff]   ;;  %v6240_v43 = vld [vmem:[%s8246_s2 + $0x270] sm:$0xff]   ;;  %v6270_v14 = vld [vmem:[%s8246_s2 + $0x3e8] sm:$0xff]  }
  0x1e   :  { %5372 = vmatprep.subr.bf16.mxu1 %v6179_v34  ;;  %v6231_v33 = vld [vmem:[%s8246_s2 + $0x298] sm:$0xff]   ;;  %v6232_v34 = vld [vmem:[%s8246_s2 + $0x260] sm:$0xff]  }
  0x20   :  { %5351 = vmatpush3.bf16.msra.mxu0 %v6180_v36  ;;  %v6233_v36 = vld [vmem:[%s8246_s2 + $0x2e0] sm:$0xff]  }
  0x21   :  { %5373 = vmatpush3.bf16.msra.mxu1 %v6181_v37  ;;  %5380 = vmatprep.subr.bf16.mxu0 %v6183_v41  ;;  %v6234_v37 = vld [vmem:[%s8246_s2 + $0x220] sm:$0xff]   ;;  %v6238_v41 = vld [vmem:[%s8246_s2 + $0x228] sm:$0xff]  }
  0x22   :  { %5402 = vmatprep.subr.bf16.mxu1 %v6184_v42  ;;  %v6239_v42 = vld [vmem:[%s8246_s2 + $0x2a8] sm:$0xff]  }
  0x23   :  { %3409 = vmatmul.mubr.bf16.vlgmr.msra.gmra.mrb[0].mxu0 %v827_v39  ;;  %v6236_v39 = vld [vmem:[%s8246_s2 + $0x268] sm:$0xff]  }
  0x24   :  { %5381 = vmatpush3.bf16.msra.mxu0 %v6185_v45  ;;  %3449 = vmatmul.mubr.bf16.vlgmr.msra.gmra.mrb[0].mxu1 %v834_v44  ;;  %v6241_v44 = vld [vmem:[%s8246_s2 + $0x2f0] sm:$0xff]  }
  0x25   :  { %5382 = vmatprep.subr.bf16.mxu0 %v6187_v48  ;;  %5403 = vmatpush3.bf16.msra.mxu1 %v6186_v46  ;;  %v6242_v45 = vld [vmem:[%s8246_s2 + $0x230] sm:$0xff]   ;;  %v6245_v48 = vld [vmem:[%s8246_s2 + $0x2f8] sm:$0xff]  }
  0x26   :  { %5404 = vmatprep.subr.bf16.mxu1 %v6188_v49  ;;  %3488 = vmatprep.mubr.bf16.mxu0 %v852_v17  ;;  %v6243_v46 = vld [vmem:[%s8246_s2 + $0x2b0] sm:$0xff]   ;;  %v6246_v49 = vld [vmem:[%s8246_s2 + $0x238] sm:$0xff]  }
  0x27   :  { %3528 = vmatprep.mubr.bf16.mxu1 %v853_v21  ;;  %v6273_v17 = vld [vmem:[%s8246_s2 + $0x370] sm:$0xff]   ;;  %v6277_v21 = vld [vmem:[%s8246_s2 + $0x378] sm:$0xff]  }
  0x28   :  { %5383 = vmatpush3.bf16.msra.mxu0 %v6189_v50  ;;  %v6247_v50 = vld [vmem:[%s8246_s2 + $0x2b8] sm:$0xff]  }
  0x29   :  { %5384 = vmatprep.subr.bf16.mxu0 %v6191_v52  ;;  %5405 = vmatpush3.bf16.msra.mxu1 %v6190_v51  ;;  %v30_v51 = vld [vmem:[%s8247_s0 + $0x10] sm:$0xff] }
  0x2a   :  { %5406 = vmatprep.subr.bf16.mxu1 %v6192_v53  ;;  %v861_v52 = vrot.slane %v30_v51, %v6692_v35  ;;  %v854_v53 = vcombine.high %v30_v51, %v30_v51  ;;  %v6301_v51 = vld [vmem:[%s8246_s2 + $0x4a0] sm:$0xff]  }
  0x2c   :  { %5385 = vmatpush3.bf16.msra.mxu0 %v6193_v54  ;;  %v6249_v54 = vld [vmem:[%s8246_s2 + $0x340] sm:$0xff]  }
  0x2d   :  { %5386 = vmatprep.subr.bf16.mxu0 %v6195_v56  ;;  %5407 = vmatpush3.bf16.msra.mxu1 %v6194_v55  ;;  %v6250_v55 = vld [vmem:[%s8246_s2 + $0x3c0] sm:$0xff]   ;;  %v869_v56 = vcombine.high %v861_v52, %v861_v52 }
  0x2e   :  { %5408 = vmatprep.subr.bf16.mxu1 %v6196_v57  ;;  %v868_v57 = vrot.slane %v854_v53, %v6692_v35  ;;  %v6303_v53 = vld [vmem:[%s8246_s2 + $0x4e8] sm:$0xff]  }
  0x30   :  { %5387 = vmatpush3.bf16.msra.mxu0 %v6197_v58  ;;  %v6251_v58 = vld [vmem:[%s8246_s2 + $0x300] sm:$0xff]  }
  0x31   :  { %5388 = vmatprep.subr.bf16.mxu0 %v6199_v60  ;;  %5409 = vmatpush3.bf16.msra.mxu1 %v6198_v59  ;;  %v6252_v59 = vld [vmem:[%s8246_s2 + $0x380] sm:$0xff]   ;;  %v870_v60 = vcombine.high %v868_v57, %v868_v57 }
  0x32   :  { %5410 = vmatprep.subr.bf16.mxu1 %v6200_v61  ;;  %v6253_v61 = vld [vmem:[%s8246_s2 + $0x348] sm:$0xff]  }
  0x34   :  { %5389 = vmatpush3.bf16.msra.mxu0 %v6201_v62  ;;  %v6254_v62 = vld [vmem:[%s8246_s2 + $0x3c8] sm:$0xff]  }
  0x35   :  { %5390 = vmatprep.subr.bf16.mxu0 %v6203_v0  ;;  %5411 = vmatpush3.bf16.msra.mxu1 %v6202_v63  ;;  %v6255_v63 = vld [vmem:[%s8246_s2 + $0x308] sm:$0xff]  }
  0x36   :  { %5412 = vmatprep.subr.bf16.mxu1 %v6204_v1  ;;  %v6256_v0 = vld [vmem:[%s8246_s2 + $0x388] sm:$0xff]   ;;  %v6257_v1 = vld [vmem:[%s8246_s2 + $0x350] sm:$0xff]  }
  0x38   :  { %5391 = vmatpush3.bf16.msra.mxu0 %v6205_v2  ;;  %v6258_v2 = vld [vmem:[%s8246_s2 + $0x3d0] sm:$0xff]  }
  0x39   :  { %5392 = vmatprep.subr.bf16.mxu0 %v6207_v4  ;;  %5413 = vmatpush3.bf16.msra.mxu1 %v6206_v3  ;;  %v6259_v3 = vld [vmem:[%s8246_s2 + $0x310] sm:$0xff]  }
  0x3a   :  { %5414 = vmatprep.subr.bf16.mxu1 %v6208_v5  ;;  %v6260_v4 = vld [vmem:[%s8246_s2 + $0x390] sm:$0xff]   ;;  %v6261_v5 = vld [vmem:[%s8246_s2 + $0x358] sm:$0xff]  }
  0x3c   :  { %5393 = vmatpush3.bf16.msra.mxu0 %v6209_v6  ;;  %v6262_v6 = vld [vmem:[%s8246_s2 + $0x3d8] sm:$0xff]  }
  0x3d   :  { %5394 = vmatprep.subr.bf16.mxu0 %v6211_v8  ;;  %5415 = vmatpush3.bf16.msra.mxu1 %v6210_v7  ;;  %v6263_v7 = vld [vmem:[%s8246_s2 + $0x318] sm:$0xff]  }
  0x3e   :  { %5416 = vmatprep.subr.bf16.mxu1 %v6212_v9  ;;  %v6264_v8 = vld [vmem:[%s8246_s2 + $0x398] sm:$0xff]   ;;  %v6265_v9 = vld [vmem:[%s8246_s2 + $0x360] sm:$0xff]  }
  0x40   :  { %5395 = vmatpush3.bf16.msra.mxu0 %v6213_v10  ;;  %v6266_v10 = vld [vmem:[%s8246_s2 + $0x3e0] sm:$0xff]  }
  0x41   :  { %5424 = vmatprep.subr.bf16.mxu0 %v6216_v15  ;;  %5417 = vmatpush3.bf16.msra.mxu1 %v6214_v11  ;;  %v6267_v11 = vld [vmem:[%s8246_s2 + $0x320] sm:$0xff]   ;;  %v6271_v15 = vld [vmem:[%s8246_s2 + $0x328] sm:$0xff]  }
  0x42   :  { %5446 = vmatprep.subr.bf16.mxu1 %v6217_v16  ;;  %v6272_v16 = vld [vmem:[%s8246_s2 + $0x3a8] sm:$0xff]  }
  0x43   :  { %3489 = vmatmul.mubr.bf16.vlgmr.msra.gmra.mrb[4].mxu0 %v844_v13  ;;  %v6269_v13 = vld [vmem:[%s8246_s2 + $0x368] sm:$0xff]  }
  0x44   :  { %5425 = vmatpush3.bf16.msra.mxu0 %v6218_v19  ;;  %3529 = vmatmul.mubr.bf16.vlgmr.msra.gmra.mrb[4].mxu1 %v851_v18  ;;  %v6274_v18 = vld [vmem:[%s8246_s2 + $0x3f0] sm:$0xff]  }
  0x45   :  { %5426 = vmatprep.subr.bf16.mxu0 %v6220_v22  ;;  %5447 = vmatpush3.bf16.msra.mxu1 %v6219_v20  ;;  %v6275_v19 = vld [vmem:[%s8246_s2 + $0x330] sm:$0xff]   ;;  %v6278_v22 = vld [vmem:[%s8246_s2 + $0x3f8] sm:$0xff]  }
  0x46   :  { %5448 = vmatprep.subr.bf16.mxu1 %v6221_v23  ;;  %3568 = vmatprep.mubr.bf16.mxu0 %v869_v56  ;;  %v6276_v20 = vld [vmem:[%s8246_s2 + $0x3b0] sm:$0xff]   ;;  %v6279_v23 = vld [vmem:[%s8246_s2 + $0x338] sm:$0xff]  }
  0x47   :  { %3608 = vmatprep.mubr.bf16.mxu1 %v870_v60  ;;  %v6306_v56 = vld [vmem:[%s8246_s2 + $0x470] sm:$0xff]   ;;  %v6310_v60 = vld [vmem:[%s8246_s2 + $0x478] sm:$0xff]  }
  0x48   :  { %5427 = vmatpush3.bf16.msra.mxu0 %v6222_v24  ;;  %v6280_v24 = vld [vmem:[%s8246_s2 + $0x3b8] sm:$0xff]  }
  0x49   :  { %5428 = vmatprep.subr.bf16.mxu0 %v6224_v26  ;;  %5449 = vmatpush3.bf16.msra.mxu1 %v6223_v25  ;;  %v31_v25 = vld [vmem:[%s8247_s0 + $0x18] sm:$0xff] }
  0x4a   :  { %5450 = vmatprep.subr.bf16.mxu1 %v6225_v27  ;;  %v878_v26 = vrot.slane %v31_v25, %v6692_v35  ;;  %v871_v27 = vcombine.high %v31_v25, %v31_v25  ;;  %v6334_v25 = vld [vmem:[%s8246_s2 + $0x5a0] sm:$0xff]  }
  0x4c   :  { %5429 = vmatpush3.bf16.msra.mxu0 %v6226_v28  ;;  %v6282_v28 = vld [vmem:[%s8246_s2 + $0x440] sm:$0xff]  }
  0x4d   :  { %5430 = vmatprep.subr.bf16.mxu0 %v6228_v30  ;;  %5451 = vmatpush3.bf16.msra.mxu1 %v6227_v29  ;;  %v6283_v29 = vld [vmem:[%s8246_s2 + $0x4c0] sm:$0xff]   ;;  %v886_v30 = vcombine.high %v878_v26, %v878_v26 }
  0x4e   :  { %5452 = vmatprep.subr.bf16.mxu1 %v6229_v31  ;;  %v885_v31 = vrot.slane %v871_v27, %v6692_v35  ;;  %v6336_v27 = vld [vmem:[%s8246_s2 + $0x5e8] sm:$0xff]  }
  0x50   :  { %5431 = vmatpush3.bf16.msra.mxu0 %v6230_v32  ;;  %v6284_v32 = vld [vmem:[%s8246_s2 + $0x400] sm:$0xff]  }
  0x51   :  { %5432 = vmatprep.subr.bf16.mxu0 %v6232_v34  ;;  %5453 = vmatpush3.bf16.msra.mxu1 %v6231_v33  ;;  %v6285_v33 = vld [vmem:[%s8246_s2 + $0x480] sm:$0xff]   ;;  %v887_v34 = vcombine.high %v885_v31, %v885_v31 }
  0x52   :  { %5454 = vmatprep.subr.bf16.mxu1 %v6233_v36  ;;  %v6286_v36 = vld [vmem:[%s8246_s2 + $0x448] sm:$0xff]  }
  0x54   :  { %5433 = vmatpush3.bf16.msra.mxu0 %v6234_v37  ;;  %v6287_v37 = vld [vmem:[%s8246_s2 + $0x4c8] sm:$0xff]  }
  0x55   :  { %5434 = vmatprep.subr.bf16.mxu0 %v6236_v39  ;;  %5455 = vmatpush3.bf16.msra.mxu1 %v6235_v38  ;;  %v6288_v38 = vld [vmem:[%s8246_s2 + $0x408] sm:$0xff]  }
  0x56   :  { %5456 = vmatprep.subr.bf16.mxu1 %v6237_v40  ;;  %v6289_v39 = vld [vmem:[%s8246_s2 + $0x488] sm:$0xff]   ;;  %v6290_v40 = vld [vmem:[%s8246_s2 + $0x450] sm:$0xff]  }
  0x58   :  { %5435 = vmatpush3.bf16.msra.mxu0 %v6238_v41  ;;  %v6291_v41 = vld [vmem:[%s8246_s2 + $0x4d0] sm:$0xff]  }
  0x59   :  { %5436 = vmatprep.subr.bf16.mxu0 %v6240_v43  ;;  %5457 = vmatpush3.bf16.msra.mxu1 %v6239_v42  ;;  %v6292_v42 = vld [vmem:[%s8246_s2 + $0x410] sm:$0xff]  }
  0x5a   :  { %5458 = vmatprep.subr.bf16.mxu1 %v6241_v44  ;;  %v6293_v43 = vld [vmem:[%s8246_s2 + $0x490] sm:$0xff]   ;;  %v6294_v44 = vld [vmem:[%s8246_s2 + $0x458] sm:$0xff]  }
  0x5c   :  { %5437 = vmatpush3.bf16.msra.mxu0 %v6242_v45  ;;  %v6295_v45 = vld [vmem:[%s8246_s2 + $0x4d8] sm:$0xff]  }
  0x5d   :  { %5438 = vmatprep.subr.bf16.mxu0 %v6244_v47  ;;  %5459 = vmatpush3.bf16.msra.mxu1 %v6243_v46  ;;  %v6296_v46 = vld [vmem:[%s8246_s2 + $0x418] sm:$0xff]  }
  0x5e   :  { %5460 = vmatprep.subr.bf16.mxu1 %v6245_v48  ;;  %v6297_v47 = vld [vmem:[%s8246_s2 + $0x498] sm:$0xff]   ;;  %v6298_v48 = vld [vmem:[%s8246_s2 + $0x460] sm:$0xff]  }
  0x60   :  { %5439 = vmatpush3.bf16.msra.mxu0 %v6246_v49  ;;  %v6299_v49 = vld [vmem:[%s8246_s2 + $0x4e0] sm:$0xff]  }
  0x61   :  { %5468 = vmatprep.subr.bf16.mxu0 %v6249_v54  ;;  %5461 = vmatpush3.bf16.msra.mxu1 %v6247_v50  ;;  %v6300_v50 = vld [vmem:[%s8246_s2 + $0x420] sm:$0xff]   ;;  %v6304_v54 = vld [vmem:[%s8246_s2 + $0x428] sm:$0xff]  }
  0x62   :  { %5490 = vmatprep.subr.bf16.mxu1 %v6250_v55  ;;  %v6305_v55 = vld [vmem:[%s8246_s2 + $0x4a8] sm:$0xff]  }
  0x63   :  { %3569 = vmatmul.mubr.bf16.vlgmr.msra.gmra.mrb[8].mxu0 %v861_v52  ;;  %v6302_v52 = vld [vmem:[%s8246_s2 + $0x468] sm:$0xff]  }
  0x64   :  { %5469 = vmatpush3.bf16.msra.mxu0 %v6251_v58  ;;  %3609 = vmatmul.mubr.bf16.vlgmr.msra.gmra.mrb[8].mxu1 %v868_v57  ;;  %v6307_v57 = vld [vmem:[%s8246_s2 + $0x4f0] sm:$0xff]  }
  0x65   :  { %5470 = vmatprep.subr.bf16.mxu0 %v6253_v61  ;;  %5491 = vmatpush3.bf16.msra.mxu1 %v6252_v59  ;;  %v6308_v58 = vld [vmem:[%s8246_s2 + $0x430] sm:$0xff]   ;;  %v6311_v61 = vld [vmem:[%s8246_s2 + $0x4f8] sm:$0xff]  }
  0x66   :  { %5492 = vmatprep.subr.bf16.mxu1 %v6254_v62  ;;  %3648 = vmatprep.mubr.bf16.mxu0 %v886_v30  ;;  %v6309_v59 = vld [vmem:[%s8246_s2 + $0x4b0] sm:$0xff]   ;;  %v6312_v62 = vld [vmem:[%s8246_s2 + $0x438] sm:$0xff]  }
  0x67   :  { %3688 = vmatprep.mubr.bf16.mxu1 %v887_v34  ;;  %v6339_v30 = vld [vmem:[%s8246_s2 + $0x570] sm:$0xff]   ;;  %v6343_v34 = vld [vmem:[%s8246_s2 + $0x578] sm:$0xff]  }
  0x68   :  { %5471 = vmatpush3.bf16.msra.mxu0 %v6255_v63  ;;  %v6313_v63 = vld [vmem:[%s8246_s2 + $0x4b8] sm:$0xff]  }
  0x69   :  { %5472 = vmatprep.subr.bf16.mxu0 %v6257_v1  ;;  %5493 = vmatpush3.bf16.msra.mxu1 %v6256_v0  ;;  %v32_v0 = vld [vmem:[%s8247_s0 + $0x20] sm:$0xff] }
  0x6a   :  { %5494 = vmatprep.subr.bf16.mxu1 %v6258_v2  ;;  %v895_v1 = vrot.slane %v32_v0, %v6692_v35  ;;  %v888_v2 = vcombine.high %v32_v0, %v32_v0  ;;  %v6367_v0 = vld [vmem:[%s8246_s2 + $0x6a0] sm:$0xff]  }
  0x6c   :  { %5473 = vmatpush3.bf16.msra.mxu0 %v6259_v3  ;;  %v6315_v3 = vld [vmem:[%s8246_s2 + $0x540] sm:$0xff]  }
  0x6d   :  { %5474 = vmatprep.subr.bf16.mxu0 %v6261_v5  ;;  %5495 = vmatpush3.bf16.msra.mxu1 %v6260_v4  ;;  %v6316_v4 = vld [vmem:[%s8246_s2 + $0x5c0] sm:$0xff]   ;;  %v903_v5 = vcombine.high %v895_v1, %v895_v1 }
  0x6e   :  { %5496 = vmatprep.subr.bf16.mxu1 %v6262_v6  ;;  %v902_v6 = vrot.slane %v888_v2, %v6692_v35  ;;  %v6369_v2 = vld [vmem:[%s8246_s2 + $0x6e8] sm:$0xff]  }
  0x70   :  { %5475 = vmatpush3.bf16.msra.mxu0 %v6263_v7  ;;  %v6317_v7 = vld [vmem:[%s8246_s2 + $0x500] sm:$0xff]  }
  0x71   :  { %5476 = vmatprep.subr.bf16.mxu0 %v6265_v9  ;;  %5497 = vmatpush3.bf16.msra.mxu1 %v6264_v8  ;;  %v6318_v8 = vld [vmem:[%s8246_s2 + $0x580] sm:$0xff]   ;;  %v904_v9 = vcombine.high %v902_v6, %v902_v6 }
  0x72   :  { %5498 = vmatprep.subr.bf16.mxu1 %v6266_v10  ;;  %v6319_v10 = vld [vmem:[%s8246_s2 + $0x548] sm:$0xff]  }
  0x74   :  { %5477 = vmatpush3.bf16.msra.mxu0 %v6267_v11  ;;  %v6320_v11 = vld [vmem:[%s8246_s2 + $0x5c8] sm:$0xff]  }
  0x75   :  { %5478 = vmatprep.subr.bf16.mxu0 %v6269_v13  ;;  %5499 = vmatpush3.bf16.msra.mxu1 %v6268_v12  ;;  %v6321_v12 = vld [vmem:[%s8246_s2 + $0x508] sm:$0xff]  }
  0x76   :  { %5500 = vmatprep.subr.bf16.mxu1 %v6270_v14  ;;  %v6322_v13 = vld [vmem:[%s8246_s2 + $0x588] sm:$0xff]   ;;  %v6323_v14 = vld [vmem:[%s8246_s2 + $0x550] sm:$0xff]  }
  0x78   :  { %5479 = vmatpush3.bf16.msra.mxu0 %v6271_v15  ;;  %v6324_v15 = vld [vmem:[%s8246_s2 + $0x5d0] sm:$0xff]  }
  0x79   :  { %5480 = vmatprep.subr.bf16.mxu0 %v6273_v17  ;;  %5501 = vmatpush3.bf16.msra.mxu1 %v6272_v16  ;;  %v6325_v16 = vld [vmem:[%s8246_s2 + $0x510] sm:$0xff]  }
  0x7a   :  { %5502 = vmatprep.subr.bf16.mxu1 %v6274_v18  ;;  %v6326_v17 = vld [vmem:[%s8246_s2 + $0x590] sm:$0xff]   ;;  %v6327_v18 = vld [vmem:[%s8246_s2 + $0x558] sm:$0xff]  }
  0x7c   :  { %5481 = vmatpush3.bf16.msra.mxu0 %v6275_v19  ;;  %v6328_v19 = vld [vmem:[%s8246_s2 + $0x5d8] sm:$0xff]  }
  0x7d   :  { %5482 = vmatprep.subr.bf16.mxu0 %v6277_v21  ;;  %5503 = vmatpush3.bf16.msra.mxu1 %v6276_v20  ;;  %v6329_v20 = vld [vmem:[%s8246_s2 + $0x518] sm:$0xff]  }
  0x7e   :  { %5504 = vmatprep.subr.bf16.mxu1 %v6278_v22  ;;  %v6330_v21 = vld [vmem:[%s8246_s2 + $0x598] sm:$0xff]   ;;  %v6331_v22 = vld [vmem:[%s8246_s2 + $0x560] sm:$0xff]  }
  0x80   :  { %5483 = vmatpush3.bf16.msra.mxu0 %v6279_v23  ;;  %v6332_v23 = vld [vmem:[%s8246_s2 + $0x5e0] sm:$0xff]  }
  0x81   :  { %5512 = vmatprep.subr.bf16.mxu0 %v6282_v28  ;;  %5505 = vmatpush3.bf16.msra.mxu1 %v6280_v24  ;;  %v6333_v24 = vld [vmem:[%s8246_s2 + $0x520] sm:$0xff]   ;;  %v6337_v28 = vld [vmem:[%s8246_s2 + $0x528] sm:$0xff]  }
  0x82   :  { %5534 = vmatprep.subr.bf16.mxu1 %v6283_v29  ;;  %v6338_v29 = vld [vmem:[%s8246_s2 + $0x5a8] sm:$0xff]  }
  0x83   :  { %3649 = vmatmul.mubr.bf16.vlgmr.msra.gmra.mrb[12].mxu0 %v878_v26  ;;  %v6335_v26 = vld [vmem:[%s8246_s2 + $0x568] sm:$0xff]  }
  0x84   :  { %5513 = vmatpush3.bf16.msra.mxu0 %v6284_v32  ;;  %3689 = vmatmul.mubr.bf16.vlgmr.msra.gmra.mrb[12].mxu1 %v885_v31  ;;  %v6340_v31 = vld [vmem:[%s8246_s2 + $0x5f0] sm:$0xff]  }
  0x85   :  { %5514 = vmatprep.subr.bf16.mxu0 %v6286_v36  ;;  %5535 = vmatpush3.bf16.msra.mxu1 %v6285_v33  ;;  %v6341_v32 = vld [vmem:[%s8246_s2 + $0x530] sm:$0xff]   ;;  %v6344_v36 = vld [vmem:[%s8246_s2 + $0x5f8] sm:$0xff]  }
  0x86   :  { %5536 = vmatprep.subr.bf16.mxu1 %v6287_v37  ;;  %3728 = vmatprep.mubr.bf16.mxu0 %v903_v5  ;;  %v6342_v33 = vld [vmem:[%s8246_s2 + $0x5b0] sm:$0xff]   ;;  %v6345_v37 = vld [vmem:[%s8246_s2 + $0x538] sm:$0xff]  }
  0x87   :  { %3768 = vmatprep.mubr.bf16.mxu1 %v904_v9  ;;  %v6372_v5 = vld [vmem:[%s8246_s2 + $0x670] sm:$0xff]   ;;  %v6376_v9 = vld [vmem:[%s8246_s2 + $0x678] sm:$0xff]  }
  0x88   :  { %5515 = vmatpush3.bf16.msra.mxu0 %v6288_v38  ;;  %v6346_v38 = vld [vmem:[%s8246_s2 + $0x5b8] sm:$0xff]  }
  0x89   :  { %5516 = vmatprep.subr.bf16.mxu0 %v6290_v40  ;;  %5537 = vmatpush3.bf16.msra.mxu1 %v6289_v39  ;;  %v33_v39 = vld [vmem:[%s8247_s0 + $0x28] sm:$0xff] }
  0x8a   :  { %5538 = vmatprep.subr.bf16.mxu1 %v6291_v41  ;;  %v912_v40 = vrot.slane %v33_v39, %v6692_v35  ;;  %v905_v41 = vcombine.high %v33_v39, %v33_v39  ;;  %v6400_v39 = vld [vmem:[%s8246_s2 + $0x7a0] sm:$0xff]  }
  0x8c   :  { %5517 = vmatpush3.bf16.msra.mxu0 %v6292_v42  ;;  %v6348_v42 = vld [vmem:[%s8246_s2 + $0x640] sm:$0xff]  }
  0x8d   :  { %5518 = vmatprep.subr.bf16.mxu0 %v6294_v44  ;;  %5539 = vmatpush3.bf16.msra.mxu1 %v6293_v43  ;;  %v6349_v43 = vld [vmem:[%s8246_s2 + $0x6c0] sm:$0xff]   ;;  %v920_v44 = vcombine.high %v912_v40, %v912_v40 }
  0x8e   :  { %5540 = vmatprep.subr.bf16.mxu1 %v6295_v45  ;;  %v919_v45 = vrot.slane %v905_v41, %v6692_v35  ;;  %v6402_v41 = vld [vmem:[%s8246_s2 + $0x7e8] sm:$0xff]  }
  0x90   :  { %5519 = vmatpush3.bf16.msra.mxu0 %v6296_v46  ;;  %v6350_v46 = vld [vmem:[%s8246_s2 + $0x600] sm:$0xff]  }
  0x91   :  { %5520 = vmatprep.subr.bf16.mxu0 %v6298_v48  ;;  %5541 = vmatpush3.bf16.msra.mxu1 %v6297_v47  ;;  %v6351_v47 = vld [vmem:[%s8246_s2 + $0x680] sm:$0xff]   ;;  %v921_v48 = vcombine.high %v919_v45, %v919_v45 }
  0x92   :  { %5542 = vmatprep.subr.bf16.mxu1 %v6299_v49  ;;  %v6352_v49 = vld [vmem:[%s8246_s2 + $0x648] sm:$0xff]  }
  0x94   :  { %5521 = vmatpush3.bf16.msra.mxu0 %v6300_v50  ;;  %v6353_v50 = vld [vmem:[%s8246_s2 + $0x6c8] sm:$0xff]  }
  0x95   :  { %5522 = vmatprep.subr.bf16.mxu0 %v6302_v52  ;;  %5543 = vmatpush3.bf16.msra.mxu1 %v6301_v51  ;;  %v6354_v51 = vld [vmem:[%s8246_s2 + $0x608] sm:$0xff]  }
  0x96   :  { %5544 = vmatprep.subr.bf16.mxu1 %v6303_v53  ;;  %v6355_v52 = vld [vmem:[%s8246_s2 + $0x688] sm:$0xff]   ;;  %v6356_v53 = vld [vmem:[%s8246_s2 + $0x650] sm:$0xff]  }
  0x98   :  { %5523 = vmatpush3.bf16.msra.mxu0 %v6304_v54  ;;  %v6357_v54 = vld [vmem:[%s8246_s2 + $0x6d0] sm:$0xff]  }
  0x99   :  { %5524 = vmatprep.subr.bf16.mxu0 %v6306_v56  ;;  %5545 = vmatpush3.bf16.msra.mxu1 %v6305_v55  ;;  %v6358_v55 = vld [vmem:[%s8246_s2 + $0x610] sm:$0xff]  }
  0x9a   :  { %5546 = vmatprep.subr.bf16.mxu1 %v6307_v57  ;;  %v6359_v56 = vld [vmem:[%s8246_s2 + $0x690] sm:$0xff]   ;;  %v6360_v57 = vld [vmem:[%s8246_s2 + $0x658] sm:$0xff]  }
  0x9c   :  { %5525 = vmatpush3.bf16.msra.mxu0 %v6308_v58  ;;  %v6361_v58 = vld [vmem:[%s8246_s2 + $0x6d8] sm:$0xff]  }
  0x9d   :  { %5526 = vmatprep.subr.bf16.mxu0 %v6310_v60  ;;  %5547 = vmatpush3.bf16.msra.mxu1 %v6309_v59  ;;  %v6362_v59 = vld [vmem:[%s8246_s2 + $0x618] sm:$0xff]  }
  0x9e   :  { %5548 = vmatprep.subr.bf16.mxu1 %v6311_v61  ;;  %v6363_v60 = vld [vmem:[%s8246_s2 + $0x698] sm:$0xff]   ;;  %v6364_v61 = vld [vmem:[%s8246_s2 + $0x660] sm:$0xff]  }
  0xa0   :  { %5527 = vmatpush3.bf16.msra.mxu0 %v6312_v62  ;;  %v6365_v62 = vld [vmem:[%s8246_s2 + $0x6e0] sm:$0xff]  }
  0xa1   :  { %5556 = vmatprep.subr.bf16.mxu0 %v6315_v3  ;;  %5549 = vmatpush3.bf16.msra.mxu1 %v6313_v63  ;;  %v6366_v63 = vld [vmem:[%s8246_s2 + $0x620] sm:$0xff]   ;;  %v6370_v3 = vld [vmem:[%s8246_s2 + $0x628] sm:$0xff]  }
  0xa2   :  { %5578 = vmatprep.subr.bf16.mxu1 %v6316_v4  ;;  %v6371_v4 = vld [vmem:[%s8246_s2 + $0x6a8] sm:$0xff]  }
  0xa3   :  { %3729 = vmatmul.mubr.bf16.vlgmr.msra.gmra.mrb[16].mxu0 %v895_v1  ;;  %v6368_v1 = vld [vmem:[%s8246_s2 + $0x668] sm:$0xff]  }
  0xa4   :  { %5557 = vmatpush3.bf16.msra.mxu0 %v6317_v7  ;;  %3769 = vmatmul.mubr.bf16.vlgmr.msra.gmra.mrb[16].mxu1 %v902_v6  ;;  %v6373_v6 = vld [vmem:[%s8246_s2 + $0x6f0] sm:$0xff]  }
  0xa5   :  { %5558 = vmatprep.subr.bf16.mxu0 %v6319_v10  ;;  %5579 = vmatpush3.bf16.msra.mxu1 %v6318_v8  ;;  %v6374_v7 = vld [vmem:[%s8246_s2 + $0x630] sm:$0xff]   ;;  %v6377_v10 = vld [vmem:[%s8246_s2 + $0x6f8] sm:$0xff]  }
  0xa6   :  { %5580 = vmatprep.subr.bf16.mxu1 %v6320_v11  ;;  %3808 = vmatprep.mubr.bf16.mxu0 %v920_v44  ;;  %v6375_v8 = vld [vmem:[%s8246_s2 + $0x6b0] sm:$0xff]   ;;  %v6378_v11 = vld [vmem:[%s8246_s2 + $0x638] sm:$0xff]  }
  0xa7   :  { %3848 = vmatprep.mubr.bf16.mxu1 %v921_v48 }
  0xa8   :  { %5559 = vmatpush3.bf16.msra.mxu0 %v6321_v12  ;;  %v6379_v12 = vld [vmem:[%s8246_s2 + $0x6b8] sm:$0xff]  }
  0xa9   :  { %5560 = vmatprep.subr.bf16.mxu0 %v6323_v14  ;;  %5581 = vmatpush3.bf16.msra.mxu1 %v6322_v13  ;;  %v34_v13 = vld [vmem:[%s8247_s0 + $0x30] sm:$0xff] }
  0xaa   :  { %5582 = vmatprep.subr.bf16.mxu1 %v6324_v15  ;;  %v929_v14 = vrot.slane %v34_v13, %v6692_v35  ;;  %v922_v15 = vcombine.high %v34_v13, %v34_v13  ;;  %v6422_v13 = vld [vmem:[%s8246_s2 + $0x850] sm:$0xff]  }
  0xac   :  { %5561 = vmatpush3.bf16.msra.mxu0 %v6325_v16  ;;  %v6381_v16 = vld [vmem:[%s8246_s2 + $0x740] sm:$0xff]  }
  0xad   :  { %5562 = vmatprep.subr.bf16.mxu0 %v6327_v18  ;;  %5583 = vmatpush3.bf16.msra.mxu1 %v6326_v17  ;;  %v6382_v17 = vld [vmem:[%s8246_s2 + $0x7c0] sm:$0xff]   ;;  %v937_v18 = vcombine.high %v929_v14, %v929_v14 }
  0xae   :  { %5584 = vmatprep.subr.bf16.mxu1 %v6328_v19  ;;  %v936_v19 = vrot.slane %v922_v15, %v6692_v35  ;;  %v6424_v15 = vld [vmem:[%s8246_s2 + $0x810] sm:$0xff]  }
  0xb0   :  { %5563 = vmatpush3.bf16.msra.mxu0 %v6329_v20  ;;  %v6383_v20 = vld [vmem:[%s8246_s2 + $0x700] sm:$0xff]  }
  0xb1   :  { %5564 = vmatprep.subr.bf16.mxu0 %v6331_v22  ;;  %5585 = vmatpush3.bf16.msra.mxu1 %v6330_v21  ;;  %v6384_v21 = vld [vmem:[%s8246_s2 + $0x780] sm:$0xff]   ;;  %v938_v22 = vcombine.high %v936_v19, %v936_v19 }
  0xb2   :  { %5586 = vmatprep.subr.bf16.mxu1 %v6332_v23  ;;  %v6385_v23 = vld [vmem:[%s8246_s2 + $0x748] sm:$0xff]  }
  0xb4   :  { %5565 = vmatpush3.bf16.msra.mxu0 %v6333_v24  ;;  %v6386_v24 = vld [vmem:[%s8246_s2 + $0x7c8] sm:$0xff]  }
  0xb5   :  { %5566 = vmatprep.subr.bf16.mxu0 %v6335_v26  ;;  %5587 = vmatpush3.bf16.msra.mxu1 %v6334_v25  ;;  %v6387_v25 = vld [vmem:[%s8246_s2 + $0x708] sm:$0xff]  }
  0xb6   :  { %5588 = vmatprep.subr.bf16.mxu1 %v6336_v27  ;;  %v6388_v26 = vld [vmem:[%s8246_s2 + $0x788] sm:$0xff]   ;;  %v6389_v27 = vld [vmem:[%s8246_s2 + $0x750] sm:$0xff]  }
  0xb8   :  { %5567 = vmatpush3.bf16.msra.mxu0 %v6337_v28  ;;  %v6390_v28 = vld [vmem:[%s8246_s2 + $0x7d0] sm:$0xff]  }
  0xb9   :  { %5568 = vmatprep.subr.bf16.mxu0 %v6339_v30  ;;  %5589 = vmatpush3.bf16.msra.mxu1 %v6338_v29  ;;  %v6391_v29 = vld [vmem:[%s8246_s2 + $0x710] sm:$0xff]  }
  0xba   :  { %5590 = vmatprep.subr.bf16.mxu1 %v6340_v31  ;;  %v6392_v30 = vld [vmem:[%s8246_s2 + $0x790] sm:$0xff]   ;;  %v6393_v31 = vld [vmem:[%s8246_s2 + $0x758] sm:$0xff]  }
  0xbc   :  { %5569 = vmatpush3.bf16.msra.mxu0 %v6341_v32  ;;  %v6394_v32 = vld [vmem:[%s8246_s2 + $0x7d8] sm:$0xff]  }
  0xbd   :  { %5570 = vmatprep.subr.bf16.mxu0 %v6343_v34  ;;  %5591 = vmatpush3.bf16.msra.mxu1 %v6342_v33  ;;  %v6395_v33 = vld [vmem:[%s8246_s2 + $0x718] sm:$0xff]  }
  0xbe   :  { %5592 = vmatprep.subr.bf16.mxu1 %v6344_v36  ;;  %v6396_v34 = vld [vmem:[%s8246_s2 + $0x798] sm:$0xff]   ;;  %v6397_v36 = vld [vmem:[%s8246_s2 + $0x760] sm:$0xff]  }
  0xc0   :  { %5571 = vmatpush3.bf16.msra.mxu0 %v6345_v37  ;;  %v6398_v37 = vld [vmem:[%s8246_s2 + $0x7e0] sm:$0xff]  }
  0xc1   :  { %5600 = vmatprep.subr.bf16.mxu0 %v6348_v42  ;;  %5593 = vmatpush3.bf16.msra.mxu1 %v6346_v38  ;;  %v6399_v38 = vld [vmem:[%s8246_s2 + $0x720] sm:$0xff]  }
  0xc2   :  { %5622 = vmatprep.subr.bf16.mxu1 %v6349_v43  ;;  %v6403_v43 = vld [vmem:[%s8246_s2 + $0x728] sm:$0xff]  }
  0xc3   :  { %3809 = vmatmul.mubr.bf16.vlgmr.msra.gmra.mrb[20].mxu0 %v912_v40  ;;  %v6401_v40 = vld [vmem:[%s8246_s2 + $0x768] sm:$0xff]  }
  0xc4   :  { %5601 = vmatpush3.bf16.msra.mxu0 %v6350_v46  ;;  %3849 = vmatmul.mubr.bf16.vlgmr.msra.gmra.mrb[20].mxu1 %v919_v45  ;;  %v6404_v45 = vld [vmem:[%s8246_s2 + $0x7a8] sm:$0xff]  }
  0xc5   :  { %5602 = vmatprep.subr.bf16.mxu0 %v6352_v49  ;;  %5623 = vmatpush3.bf16.msra.mxu1 %v6351_v47  ;;  %v6405_v49 = vld [vmem:[%s8246_s2 + $0x770] sm:$0xff]  }
  0xc6   :  { %5624 = vmatprep.subr.bf16.mxu1 %v6353_v50  ;;  %3888 = vmatprep.mubr.bf16.mxu0 %v937_v18  ;;  %v6406_v50 = vld [vmem:[%s8246_s2 + $0x7f0] sm:$0xff]   ;;  %v6427_v18 = vld [vmem:[%s8246_s2 + $0x8d8] sm:$0xff]  }
  0xc7   :  { %3928 = vmatprep.mubr.bf16.mxu1 %v938_v22  ;;  %v6431_v22 = vld [vmem:[%s8246_s2 + $0x8e0] sm:$0xff]  }
  0xc8   :  { %5603 = vmatpush3.bf16.msra.mxu0 %v6354_v51 }
  0xc9   :  { %5604 = vmatprep.subr.bf16.mxu0 %v6356_v53  ;;  %5625 = vmatpush3.bf16.msra.mxu1 %v6355_v52 }
  0xca   :  { %5626 = vmatprep.subr.bf16.mxu1 %v6357_v54 }
  0xcc   :  { %5605 = vmatpush3.bf16.msra.mxu0 %v6358_v55  ;;  %v6407_v55 = vld [vmem:[%s8246_s2 + $0x730] sm:$0xff]  }
  0xcd   :  { %5606 = vmatprep.subr.bf16.mxu0 %v6360_v57  ;;  %5627 = vmatpush3.bf16.msra.mxu1 %v6359_v56  ;;  %v6408_v57 = vld [vmem:[%s8246_s2 + $0x7b0] sm:$0xff]  }
  0xce   :  { %5628 = vmatprep.subr.bf16.mxu1 %v6361_v58 }
  0xd0   :  { %5607 = vmatpush3.bf16.msra.mxu0 %v6362_v59  ;;  %v6409_v59 = vld [vmem:[%s8246_s2 + $0x778] sm:$0xff]  }
  0xd1   :  { %5608 = vmatprep.subr.bf16.mxu0 %v6364_v61  ;;  %5629 = vmatpush3.bf16.msra.mxu1 %v6363_v60  ;;  %v6410_v60 = vld [vmem:[%s8246_s2 + $0x7f8] sm:$0xff]  }
  0xd2   :  { %5630 = vmatprep.subr.bf16.mxu1 %v6365_v62  ;;  %v6411_v61 = vld [vmem:[%s8246_s2 + $0x738] sm:$0xff]  }
  0xd3   :  { %v6412_v62 = vld [vmem:[%s8246_s2 + $0x7b8] sm:$0xff]  }
  0xd4   :  { %5609 = vmatpush3.bf16.msra.mxu0 %v6366_v63  ;;  %v35_v63 = vld [vmem:[%s8247_s0 + $0x38] sm:$0xff] }
  0xd5   :  { %5610 = vmatprep.subr.bf16.mxu0 %v6368_v1  ;;  %5631 = vmatpush3.bf16.msra.mxu1 %v6367_v0  ;;  %v946_v0 = vrot.slane %v35_v63, %v6692_v35  ;;  %v939_v1 = vcombine.high %v35_v63, %v35_v63  ;;  %v6454_v63 = vld [vmem:[%s8246_s2 + $0x988] sm:$0xff]  }
  0xd6   :  { %5632 = vmatprep.subr.bf16.mxu1 %v6369_v2  ;;  %v6414_v2 = vld [vmem:[%s8246_s2 + $0x840] sm:$0xff]  }
  0xd8   :  { %5611 = vmatpush3.bf16.msra.mxu0 %v6370_v3  ;;  %v6415_v3 = vld [vmem:[%s8246_s2 + $0x8c0] sm:$0xff]  }
  0xd9   :  { %5612 = vmatprep.subr.bf16.mxu0 %v6372_v5  ;;  %5633 = vmatpush3.bf16.msra.mxu1 %v6371_v4  ;;  %v954_v4 = vcombine.high %v946_v0, %v946_v0  ;;  %v953_v5 = vrot.slane %v939_v1, %v6692_v35  ;;  %v6456_v1 = vld [vmem:[%s8246_s2 + $0x9d0] sm:$0xff]  }
  0xda   :  { %5634 = vmatprep.subr.bf16.mxu1 %v6373_v6  ;;  %v6416_v6 = vld [vmem:[%s8246_s2 + $0x800] sm:$0xff]  }
  0xdc   :  { %5613 = vmatpush3.bf16.msra.mxu0 %v6374_v7  ;;  %v6417_v7 = vld [vmem:[%s8246_s2 + $0x880] sm:$0xff]  }
  0xdd   :  { %5614 = vmatprep.subr.bf16.mxu0 %v6376_v9  ;;  %5635 = vmatpush3.bf16.msra.mxu1 %v6375_v8  ;;  %v955_v8 = vcombine.high %v953_v5, %v953_v5  ;;  %v6418_v9 = vld [vmem:[%s8246_s2 + $0x848] sm:$0xff]  }
  0xde   :  { %5636 = vmatprep.subr.bf16.mxu1 %v6377_v10  ;;  %v6419_v10 = vld [vmem:[%s8246_s2 + $0x8c8] sm:$0xff]  }
  0xe0   :  { %5615 = vmatpush3.bf16.msra.mxu0 %v6378_v11  ;;  %v6420_v11 = vld [vmem:[%s8246_s2 + $0x808] sm:$0xff]  }
  0xe1   :  { %5644 = vmatprep.subr.bf16.mxu0 %v6381_v16  ;;  %5637 = vmatpush3.bf16.msra.mxu1 %v6379_v12  ;;  %v6421_v12 = vld [vmem:[%s8246_s2 + $0x888] sm:$0xff]   ;;  %v6425_v16 = vld [vmem:[%s8246_s2 + $0x890] sm:$0xff]  }
  0xe2   :  { %5666 = vmatprep.subr.bf16.mxu1 %v6382_v17  ;;  %v6426_v17 = vld [vmem:[%s8246_s2 + $0x858] sm:$0xff]  }
  0xe3   :  { %3889 = vmatmul.mubr.bf16.vlgmr.msra.gmra.mrb[24].mxu0 %v929_v14  ;;  %v6423_v14 = vld [vmem:[%s8246_s2 + $0x8d0] sm:$0xff]  }
  0xe4   :  { %5645 = vmatpush3.bf16.msra.mxu0 %v6383_v20  ;;  %3929 = vmatmul.mubr.bf16.vlgmr.msra.gmra.mrb[24].mxu1 %v936_v19  ;;  %v6428_v19 = vld [vmem:[%s8246_s2 + $0x818] sm:$0xff]  }
  0xe5   :  { %5646 = vmatprep.subr.bf16.mxu0 %v6385_v23  ;;  %5667 = vmatpush3.bf16.msra.mxu1 %v6384_v21  ;;  %v6429_v20 = vld [vmem:[%s8246_s2 + $0x898] sm:$0xff]   ;;  %v6430_v21 = vld [vmem:[%s8246_s2 + $0x860] sm:$0xff]  }
  0xe6   :  { %5668 = vmatprep.subr.bf16.mxu1 %v6386_v24  ;;  %3968 = vmatprep.mubr.bf16.mxu0 %v954_v4  ;;  %v6432_v23 = vld [vmem:[%s8246_s2 + $0x820] sm:$0xff]   ;;  %v6459_v4 = vld [vmem:[%s8246_s2 + $0x958] sm:$0xff]  }
  0xe7   :  { %4008 = vmatprep.mubr.bf16.mxu1 %v955_v8  ;;  %v6433_v24 = vld [vmem:[%s8246_s2 + $0x8a0] sm:$0xff]  }
  0xe8   :  { %5647 = vmatpush3.bf16.msra.mxu0 %v6387_v25  ;;  %v6434_v25 = vld [vmem:[%s8246_s2 + $0x868] sm:$0xff]   ;;  %v6463_v8 = vld [vmem:[%s8246_s2 + $0x960] sm:$0xff]  }
  0xe9   :  { %5648 = vmatprep.subr.bf16.mxu0 %v6389_v27  ;;  %5669 = vmatpush3.bf16.msra.mxu1 %v6388_v26  ;;  %v6435_v26 = vld [vmem:[%s8246_s2 + $0x8e8] sm:$0xff]  }
  0xea   :  { %5670 = vmatprep.subr.bf16.mxu1 %v6390_v28  ;;  %v6436_v28 = vld [vmem:[%s8246_s2 + $0x828] sm:$0xff]  }
  0xec   :  { %5649 = vmatpush3.bf16.msra.mxu0 %v6391_v29 }
  0xed   :  { %5650 = vmatprep.subr.bf16.mxu0 %v6393_v31  ;;  %5671 = vmatpush3.bf16.msra.mxu1 %v6392_v30  ;;  %v6437_v30 = vld [vmem:[%s8246_s2 + $0x8a8] sm:$0xff]  }
  0xee   :  { %5672 = vmatprep.subr.bf16.mxu1 %v6394_v32 }
  0xf0   :  { %5651 = vmatpush3.bf16.msra.mxu0 %v6395_v33 }
  0xf1   :  { %5652 = vmatprep.subr.bf16.mxu0 %v6397_v36  ;;  %5673 = vmatpush3.bf16.msra.mxu1 %v6396_v34 }
  0xf2   :  { %5674 = vmatprep.subr.bf16.mxu1 %v6398_v37  ;;  %v6438_v37 = vld [vmem:[%s8246_s2 + $0x870] sm:$0xff]  }
  0xf4   :  { %5653 = vmatpush3.bf16.msra.mxu0 %v6399_v38  ;;  %v6439_v38 = vld [vmem:[%s8246_s2 + $0x8f0] sm:$0xff]  }
  0xf5   :  { %5654 = vmatprep.subr.bf16.mxu0 %v6401_v40  ;;  %5675 = vmatpush3.bf16.msra.mxu1 %v6400_v39 }
  0xf6   :  { %v5352_v42 = vpop.f32.mrb[0].mxu0  ;;  %5676 = vmatprep.subr.bf16.mxu1 %v6402_v41 }
  0xf7   :  { %v5353_v44 = vpop.f32.mrb[1].mxu0  ;;  %v5374_v46 = vpop.f32.mrb[0].mxu1 }
  0xf8   :  { %v5354_v47 = vadd.f32 %v5353_v44, %v5352_v42  ;;  %v5355_v48 = vpop.f32.mrb[2].mxu0  ;;  %v5375_v51 = vpop.f32.mrb[1].mxu1  ;;  %5655 = vmatpush3.bf16.msra.mxu0 %v6403_v43  ;;  %v6440_v42 = vld [vmem:[%s8246_s2 + $0x830] sm:$0xff]  }
  0xf9   :  { %v5356_v52 = vpop.f32.mrb[3].mxu0  ;;  %v5376_v53 = vadd.f32 %v5375_v51, %v5374_v46  ;;  %v5377_v54 = vpop.f32.mrb[2].mxu1  ;;  %5656 = vmatprep.subr.bf16.mxu0 %v6405_v49  ;;  %5677 = vmatpush3.bf16.msra.mxu1 %v6404_v45  ;;  %v6441_v44 = vld [vmem:[%s8246_s2 + $0x8b0] sm:$0xff]   ;;  %v6442_v46 = vld [vmem:[%s8246_s2 + $0x878] sm:$0xff]  }
  0xfa   :  { %v5378_v56 = vpop.f32.mrb[3].mxu1  ;;  %5678 = vmatprep.subr.bf16.mxu1 %v6406_v50  ;;  %v6444_v48 = vld [vmem:[%s8246_s2 + $0x838] sm:$0xff]   ;;  %v36_v50 = vld [vmem:[%s8247_s0 + $0x40] sm:$0xff] }
  0xfb   :  { %v7395_v58 = vadd.f32 %v5376_v53, %v5354_v47  ;;  %v6443_v47 = vld [vmem:[%s8246_s2 + $0x8f8] sm:$0xff]   ;;  %v963_v51 = vrot.slane %v36_v50, %v6692_v35  ;;  %v956_v52 = vcombine.high %v36_v50, %v36_v50  ;;  %v6447_v53 = vld [vmem:[%s8246_s2 + $0x940] sm:$0xff]   ;;  %v6487_v50 = vld [vmem:[%s8246_s2 + $0xa88] sm:$0xff]  }
  0xfc   :  { %5657 = vmatpush3.bf16.msra.mxu0 %v6407_v55  ;;  %v6445_v49 = vld [vmem:[%s8246_s2 + $0x8b8] sm:$0xff]   ;;  %v6448_v54 = vld [vmem:[%s8246_s2 + $0x9c0] sm:$0xff]  }
  0xfd   :  { %5658 = vmatprep.subr.bf16.mxu0 %v6409_v59  ;;  %5679 = vmatpush3.bf16.msra.mxu1 %v6408_v57  ;;  %v971_v55 = vcombine.high %v963_v51, %v963_v51  ;;  %v970_v56 = vrot.slane %v956_v52, %v6692_v35  ;;  %v6449_v57 = vld [vmem:[%s8246_s2 + $0x900] sm:$0xff]   ;;  %v6489_v52 = vld [vmem:[%s8246_s2 + $0xad0] sm:$0xff]  }
  0xfe   :  { %5680 = vmatprep.subr.bf16.mxu1 %v6410_v60  ;;  %v6451_v60 = vld [vmem:[%s8246_s2 + $0x948] sm:$0xff]  }
  0xff   :  { %v972_v59 = vcombine.high %v970_v56, %v970_v56 }
 0x100   :  { %5659 = vmatpush3.bf16.msra.mxu0 %v6411_v61  ;;  %v6452_v61 = vld [vmem:[%s8246_s2 + $0x9c8] sm:$0xff]  }
 0x101   :  { %5688 = vmatprep.subr.bf16.mxu0 %v6414_v2  ;;  %5681 = vmatpush3.bf16.msra.mxu1 %v6412_v62  ;;  %v6453_v62 = vld [vmem:[%s8246_s2 + $0x908] sm:$0xff]   ;;  %v6457_v2 = vld [vmem:[%s8246_s2 + $0x910] sm:$0xff]  }
 0x102   :  { %5710 = vmatprep.subr.bf16.mxu1 %v6415_v3  ;;  %v6458_v3 = vld [vmem:[%s8246_s2 + $0x990] sm:$0xff]  }
 0x103   :  { %3969 = vmatmul.mubr.bf16.vlgmr.msra.gmra.mrb[28].mxu0 %v946_v0  ;;  %v6455_v0 = vld [vmem:[%s8246_s2 + $0x950] sm:$0xff]  }
 0x104   :  { %5689 = vmatpush3.bf16.msra.mxu0 %v6416_v6  ;;  %4009 = vmatmul.mubr.bf16.vlgmr.msra.gmra.mrb[28].mxu1 %v953_v5  ;;  %v6460_v5 = vld [vmem:[%s8246_s2 + $0x9d8] sm:$0xff]  }
 0x105   :  { %5690 = vmatprep.subr.bf16.mxu0 %v6418_v9  ;;  %5711 = vmatpush3.bf16.msra.mxu1 %v6417_v7  ;;  %v6461_v6 = vld [vmem:[%s8246_s2 + $0x918] sm:$0xff]   ;;  %v6464_v9 = vld [vmem:[%s8246_s2 + $0x9e0] sm:$0xff]  }
 0x106   :  { %5712 = vmatprep.subr.bf16.mxu1 %v6419_v10  ;;  %4048 = vmatprep.mubr.bf16.mxu0 %v971_v55  ;;  %v6462_v7 = vld [vmem:[%s8246_s2 + $0x998] sm:$0xff]   ;;  %v6465_v10 = vld [vmem:[%s8246_s2 + $0x920] sm:$0xff]  }
 0x107   :  { %4088 = vmatprep.mubr.bf16.mxu1 %v972_v59  ;;  %v6492_v55 = vld [vmem:[%s8246_s2 + $0xa58] sm:$0xff]   ;;  %v6496_v59 = vld [vmem:[%s8246_s2 + $0xa60] sm:$0xff]  }
 0x108   :  { %5691 = vmatpush3.bf16.msra.mxu0 %v6420_v11  ;;  %v6466_v11 = vld [vmem:[%s8246_s2 + $0x9a0] sm:$0xff]  }
 0x109   :  { %5692 = vmatprep.subr.bf16.mxu0 %v6422_v13  ;;  %5713 = vmatpush3.bf16.msra.mxu1 %v6421_v12  ;;  %v6467_v12 = vld [vmem:[%s8246_s2 + $0x968] sm:$0xff]  }
 0x10a   :  { %5714 = vmatprep.subr.bf16.mxu1 %v6423_v14  ;;  %v6468_v14 = vld [vmem:[%s8246_s2 + $0x9e8] sm:$0xff]  }
 0x10c   :  { %5693 = vmatpush3.bf16.msra.mxu0 %v6424_v15 }
 0x10d   :  { %5694 = vmatprep.subr.bf16.mxu0 %v6426_v17  ;;  %5715 = vmatpush3.bf16.msra.mxu1 %v6425_v16  ;;  %v6469_v16 = vld [vmem:[%s8246_s2 + $0x928] sm:$0xff]  }
 0x10e   :  { %5716 = vmatprep.subr.bf16.mxu1 %v6427_v18 }
 0x110   :  { %5695 = vmatpush3.bf16.msra.mxu0 %v6428_v19 }
 0x111   :  { %5696 = vmatprep.subr.bf16.mxu0 %v6430_v21  ;;  %5717 = vmatpush3.bf16.msra.mxu1 %v6429_v20  ;;  %v6470_v20 = vld [vmem:[%s8246_s2 + $0x9a8] sm:$0xff]   ;;  %v6471_v21 = vld [vmem:[%s8246_s2 + $0x970] sm:$0xff]  }
 0x112   :  { %5718 = vmatprep.subr.bf16.mxu1 %v6431_v22 }
 0x114   :  { %5697 = vmatpush3.bf16.msra.mxu0 %v6432_v23 }
 0x115   :  { %5698 = vmatprep.subr.bf16.mxu0 %v6434_v25  ;;  %5719 = vmatpush3.bf16.msra.mxu1 %v6433_v24 }
 0x116   :  { %v5396_v27 = vpop.f32.mrb[4].mxu0  ;;  %5720 = vmatprep.subr.bf16.mxu1 %v6435_v26 }
 0x117   :  { %v5397_v29 = vpop.f32.mrb[5].mxu0  ;;  %v5418_v31 = vpop.f32.mrb[4].mxu1 }
 0x118   :  { %v5398_v32 = vadd.f32 %v5397_v29, %v5396_v27  ;;  %v5399_v33 = vpop.f32.mrb[6].mxu0  ;;  %v5419_v34 = vpop.f32.mrb[5].mxu1  ;;  %5699 = vmatpush3.bf16.msra.mxu0 %v6436_v28  ;;  %v6472_v27 = vld [vmem:[%s8246_s2 + $0x9f0] sm:$0xff]  }
 0x119   :  { %v5400_v36 = vpop.f32.mrb[7].mxu0  ;;  %v5420_v40 = vadd.f32 %v5419_v34, %v5418_v31  ;;  %v5421_v41 = vpop.f32.mrb[6].mxu1  ;;  %5700 = vmatprep.subr.bf16.mxu0 %v6438_v37  ;;  %5721 = vmatpush3.bf16.msra.mxu1 %v6437_v30  ;;  %v6473_v29 = vld [vmem:[%s8246_s2 + $0x930] sm:$0xff]   ;;  %v6476_v33 = vld [vmem:[%s8246_s2 + $0x9f8] sm:$0xff]   ;;  %v37_v37 = vld [vmem:[%s8247_s0 + $0x48] sm:$0xff] }
 0x11a   :  { %v3491_v39 = vadd.f32 %v5398_v32, %v7395_v58  ;;  %v5422_v43 = vpop.f32.mrb[7].mxu1  ;;  %5722 = vmatprep.subr.bf16.mxu1 %v6439_v38  ;;  %v6450_v58 = vld [vmem:[%s8246_s2 + $0x980] sm:$0xff]   ;;  %v6474_v31 = vld [vmem:[%s8246_s2 + $0x9b0] sm:$0xff]   ;;  %v6475_v32 = vld [vmem:[%s8246_s2 + $0x978] sm:$0xff]   ;;  %v980_v38 = vrot.slane %v37_v37, %v6692_v35 }
 0x11b   :  { %v6477_v34 = vld [vmem:[%s8246_s2 + $0x938] sm:$0xff]   ;;  %v6481_v41 = vld [vmem:[%s8246_s2 + $0xac0] sm:$0xff]  }
 0x11c   :  { %v7499_v45 = vadd.f32 %v5420_v40, %v3491_v39  ;;  %5701 = vmatpush3.bf16.msra.mxu0 %v6440_v42  ;;  %v6478_v36 = vld [vmem:[%s8246_s2 + $0x9b8] sm:$0xff]   ;;  %v973_v39 = vcombine.high %v37_v37, %v37_v37  ;;  %v6480_v40 = vld [vmem:[%s8246_s2 + $0xa40] sm:$0xff]   ;;  %v988_v42 = vcombine.high %v980_v38, %v980_v38  ;;  %v6520_v37 = vld [vmem:[%s8246_s2 + $0xb88] sm:$0xff]  }
 0x11d   :  { %5702 = vmatprep.subr.bf16.mxu0 %v6442_v46  ;;  %5723 = vmatpush3.bf16.msra.mxu1 %v6441_v44  ;;  %v6482_v44 = vld [vmem:[%s8246_s2 + $0xa00] sm:$0xff]  }
 0x11e   :  { %5724 = vmatprep.subr.bf16.mxu1 %v6443_v47  ;;  %v987_v43 = vrot.slane %v973_v39, %v6692_v35  ;;  %v6484_v47 = vld [vmem:[%s8246_s2 + $0xa48] sm:$0xff]   ;;  %v6522_v39 = vld [vmem:[%s8246_s2 + $0xbd0] sm:$0xff]  }
 0x120   :  { %5703 = vmatpush3.bf16.msra.mxu0 %v6444_v48  ;;  %v989_v46 = vcombine.high %v987_v43, %v987_v43  ;;  %v6485_v48 = vld [vmem:[%s8246_s2 + $0xac8] sm:$0xff]  }
 0x121   :  { %5732 = vmatprep.subr.bf16.mxu0 %v6447_v53  ;;  %5725 = vmatpush3.bf16.msra.mxu1 %v6445_v49  ;;  %v6486_v49 = vld [vmem:[%s8246_s2 + $0xa08] sm:$0xff]   ;;  %v6490_v53 = vld [vmem:[%s8246_s2 + $0xa10] sm:$0xff]  }
 0x122   :  { %5754 = vmatprep.subr.bf16.mxu1 %v6448_v54  ;;  %v6491_v54 = vld [vmem:[%s8246_s2 + $0xa90] sm:$0xff]  }
 0x123   :  { %4049 = vmatmul.mubr.bf16.vlgmr.msra.gmra.mrb[32].mxu0 %v963_v51  ;;  %v6488_v51 = vld [vmem:[%s8246_s2 + $0xa50] sm:$0xff]  }
 0x124   :  { %5733 = vmatpush3.bf16.msra.mxu0 %v6449_v57  ;;  %4089 = vmatmul.mubr.bf16.vlgmr.msra.gmra.mrb[32].mxu1 %v970_v56  ;;  %v6493_v56 = vld [vmem:[%s8246_s2 + $0xad8] sm:$0xff]  }
 0x125   :  { %5734 = vmatprep.subr.bf16.mxu0 %v6451_v60  ;;  %5755 = vmatpush3.bf16.msra.mxu1 %v6450_v58  ;;  %v6494_v57 = vld [vmem:[%s8246_s2 + $0xa18] sm:$0xff]   ;;  %v6497_v60 = vld [vmem:[%s8246_s2 + $0xae0] sm:$0xff]  }
 0x126   :  { %5756 = vmatprep.subr.bf16.mxu1 %v6452_v61  ;;  %4128 = vmatprep.mubr.bf16.mxu0 %v988_v42  ;;  %v6495_v58 = vld [vmem:[%s8246_s2 + $0xa98] sm:$0xff]   ;;  %v6498_v61 = vld [vmem:[%s8246_s2 + $0xa20] sm:$0xff]  }
 0x127   :  { %4168 = vmatprep.mubr.bf16.mxu1 %v989_v46  ;;  %v6525_v42 = vld [vmem:[%s8246_s2 + $0xb58] sm:$0xff]   ;;  %v6529_v46 = vld [vmem:[%s8246_s2 + $0xb60] sm:$0xff]  }
 0x128   :  { %5735 = vmatpush3.bf16.msra.mxu0 %v6453_v62  ;;  %v6499_v62 = vld [vmem:[%s8246_s2 + $0xaa0] sm:$0xff]  }
 0x129   :  { %5736 = vmatprep.subr.bf16.mxu0 %v6455_v0  ;;  %5757 = vmatpush3.bf16.msra.mxu1 %v6454_v63  ;;  %v6500_v63 = vld [vmem:[%s8246_s2 + $0xa68] sm:$0xff]  }
 0x12a   :  { %5758 = vmatprep.subr.bf16.mxu1 %v6456_v1  ;;  %v6501_v1 = vld [vmem:[%s8246_s2 + $0xae8] sm:$0xff]  }
 0x12c   :  { %5737 = vmatpush3.bf16.msra.mxu0 %v6457_v2 }
 0x12d   :  { %5738 = vmatprep.subr.bf16.mxu0 %v6459_v4  ;;  %5759 = vmatpush3.bf16.msra.mxu1 %v6458_v3  ;;  %v6502_v3 = vld [vmem:[%s8246_s2 + $0xa28] sm:$0xff]  }
 0x12e   :  { %5760 = vmatprep.subr.bf16.mxu1 %v6460_v5 }
 0x130   :  { %5739 = vmatpush3.bf16.msra.mxu0 %v6461_v6 }
 0x131   :  { %5740 = vmatprep.subr.bf16.mxu0 %v6463_v8  ;;  %5761 = vmatpush3.bf16.msra.mxu1 %v6462_v7  ;;  %v6503_v7 = vld [vmem:[%s8246_s2 + $0xaa8] sm:$0xff]   ;;  %v6504_v8 = vld [vmem:[%s8246_s2 + $0xa70] sm:$0xff]  }
 0x132   :  { %5762 = vmatprep.subr.bf16.mxu1 %v6464_v9 }
 0x134   :  { %5741 = vmatpush3.bf16.msra.mxu0 %v6465_v10 }
 0x135   :  { %5742 = vmatprep.subr.bf16.mxu0 %v6467_v12  ;;  %5763 = vmatpush3.bf16.msra.mxu1 %v6466_v11 }
 0x136   :  { %v5440_v13 = vpop.f32.mrb[8].mxu0  ;;  %5764 = vmatprep.subr.bf16.mxu1 %v6468_v14  ;;  %v6505_v14 = vld [vmem:[%s8246_s2 + $0xaf0] sm:$0xff]  }
 0x137   :  { %v5441_v15 = vpop.f32.mrb[9].mxu0  ;;  %v5462_v17 = vpop.f32.mrb[8].mxu1 }
 0x138   :  { %v5442_v18 = vadd.f32 %v5441_v15, %v5440_v13  ;;  %v5443_v19 = vpop.f32.mrb[10].mxu0  ;;  %v5463_v22 = vpop.f32.mrb[9].mxu1  ;;  %5743 = vmatpush3.bf16.msra.mxu0 %v6469_v16  ;;  %v6506_v16 = vld [vmem:[%s8246_s2 + $0xa30] sm:$0xff]  }
 0x139   :  { %v5444_v23 = vpop.f32.mrb[11].mxu0  ;;  %v5464_v25 = vadd.f32 %v5463_v22, %v5462_v17  ;;  %v5465_v26 = vpop.f32.mrb[10].mxu1  ;;  %5744 = vmatprep.subr.bf16.mxu0 %v6471_v21  ;;  %5765 = vmatpush3.bf16.msra.mxu1 %v6470_v20  ;;  %v6508_v19 = vld [vmem:[%s8246_s2 + $0xa78] sm:$0xff]  }
 0x13a   :  { %v3571_v24 = vadd.f32 %v5442_v18, %v7499_v45  ;;  %v5466_v28 = vpop.f32.mrb[11].mxu1  ;;  %5766 = vmatprep.subr.bf16.mxu1 %v6472_v27  ;;  %v6483_v45 = vld [vmem:[%s8246_s2 + $0xa80] sm:$0xff]   ;;  %v6507_v18 = vld [vmem:[%s8246_s2 + $0xab0] sm:$0xff]   ;;  %v6509_v20 = vld [vmem:[%s8246_s2 + $0xaf8] sm:$0xff]  }
 0x13b   :  { %v6510_v21 = vld [vmem:[%s8246_s2 + $0xa38] sm:$0xff]   ;;  %v38_v23 = vld [vmem:[%s8247_s0 + $0x50] sm:$0xff]  ;;  %v6513_v26 = vld [vmem:[%s8246_s2 + $0xb40] sm:$0xff]  }
 0x13c   :  { %v7600_v30 = vadd.f32 %v5464_v25, %v3571_v24  ;;  %5745 = vmatpush3.bf16.msra.mxu0 %v6473_v29  ;;  %v6511_v22 = vld [vmem:[%s8246_s2 + $0xab8] sm:$0xff]   ;;  %v997_v24 = vrot.slane %v38_v23, %v6692_v35  ;;  %v990_v25 = vcombine.high %v38_v23, %v38_v23  ;;  %v6514_v27 = vld [vmem:[%s8246_s2 + $0xbc0] sm:$0xff]  }
 0x13d   :  { %5746 = vmatprep.subr.bf16.mxu0 %v6475_v32  ;;  %5767 = vmatpush3.bf16.msra.mxu1 %v6474_v31  ;;  %v6516_v31 = vld [vmem:[%s8246_s2 + $0xb80] sm:$0xff]  }
 0x13e   :  { %5768 = vmatprep.subr.bf16.mxu1 %v6476_v33  ;;  %v1005_v28 = vcombine.high %v997_v24, %v997_v24  ;;  %v1004_v29 = vrot.slane %v990_v25, %v6692_v35  ;;  %v6517_v33 = vld [vmem:[%s8246_s2 + $0xb48] sm:$0xff]  }
 0x140   :  { %5747 = vmatpush3.bf16.msra.mxu0 %v6477_v34  ;;  %v1006_v32 = vcombine.high %v1004_v29, %v1004_v29  ;;  %v6518_v34 = vld [vmem:[%s8246_s2 + $0xbc8] sm:$0xff]  }
 0x141   :  { %5776 = vmatprep.subr.bf16.mxu0 %v6480_v40  ;;  %5769 = vmatpush3.bf16.msra.mxu1 %v6478_v36  ;;  %v6519_v36 = vld [vmem:[%s8246_s2 + $0xb08] sm:$0xff]   ;;  %v6523_v40 = vld [vmem:[%s8246_s2 + $0xb10] sm:$0xff]  }
 0x142   :  { %5798 = vmatprep.subr.bf16.mxu1 %v6481_v41  ;;  %v6524_v41 = vld [vmem:[%s8246_s2 + $0xb90] sm:$0xff]  }
 0x143   :  { %4129 = vmatmul.mubr.bf16.vlgmr.msra.gmra.mrb[36].mxu0 %v980_v38  ;;  %v6521_v38 = vld [vmem:[%s8246_s2 + $0xb50] sm:$0xff]  }
 0x144   :  { %5777 = vmatpush3.bf16.msra.mxu0 %v6482_v44  ;;  %4169 = vmatmul.mubr.bf16.vlgmr.msra.gmra.mrb[36].mxu1 %v987_v43  ;;  %v6526_v43 = vld [vmem:[%s8246_s2 + $0xbd8] sm:$0xff]  }
 0x145   :  { %5778 = vmatprep.subr.bf16.mxu0 %v6484_v47  ;;  %5799 = vmatpush3.bf16.msra.mxu1 %v6483_v45  ;;  %v6527_v44 = vld [vmem:[%s8246_s2 + $0xb18] sm:$0xff]   ;;  %v6530_v47 = vld [vmem:[%s8246_s2 + $0xbe0] sm:$0xff]  }
 0x146   :  { %5800 = vmatprep.subr.bf16.mxu1 %v6485_v48  ;;  %4208 = vmatprep.mubr.bf16.mxu0 %v1005_v28  ;;  %v6528_v45 = vld [vmem:[%s8246_s2 + $0xb98] sm:$0xff]   ;;  %v6531_v48 = vld [vmem:[%s8246_s2 + $0xb20] sm:$0xff]  }
 0x147   :  { %4248 = vmatprep.mubr.bf16.mxu1 %v1006_v32 }
 0x148   :  { %5779 = vmatpush3.bf16.msra.mxu0 %v6486_v49  ;;  %v6532_v49 = vld [vmem:[%s8246_s2 + $0xba0] sm:$0xff]  }
 0x149   :  { %5780 = vmatprep.subr.bf16.mxu0 %v6488_v51  ;;  %5801 = vmatpush3.bf16.msra.mxu1 %v6487_v50  ;;  %v6533_v50 = vld [vmem:[%s8246_s2 + $0xb68] sm:$0xff]  }
 0x14a   :  { %5802 = vmatprep.subr.bf16.mxu1 %v6489_v52  ;;  %v6534_v52 = vld [vmem:[%s8246_s2 + $0xbe8] sm:$0xff]  }
 0x14c   :  { %5781 = vmatpush3.bf16.msra.mxu0 %v6490_v53 }
 0x14d   :  { %5782 = vmatprep.subr.bf16.mxu0 %v6492_v55  ;;  %5803 = vmatpush3.bf16.msra.mxu1 %v6491_v54  ;;  %v6535_v54 = vld [vmem:[%s8246_s2 + $0xb28] sm:$0xff]  }
 0x14e   :  { %5804 = vmatprep.subr.bf16.mxu1 %v6493_v56 }
 0x150   :  { %5783 = vmatpush3.bf16.msra.mxu0 %v6494_v57 }
 0x151   :  { %5784 = vmatprep.subr.bf16.mxu0 %v6496_v59  ;;  %5805 = vmatpush3.bf16.msra.mxu1 %v6495_v58  ;;  %v6536_v59 = vld [vmem:[%s8246_s2 + $0xba8] sm:$0xff]  }
 0x152   :  { %5806 = vmatprep.subr.bf16.mxu1 %v6497_v60 }
 0x154   :  { %5785 = vmatpush3.bf16.msra.mxu0 %v6498_v61  ;;  %v6537_v61 = vld [vmem:[%s8246_s2 + $0xb70] sm:$0xff]  }
 0x155   :  { %5786 = vmatprep.subr.bf16.mxu0 %v6500_v63  ;;  %5807 = vmatpush3.bf16.msra.mxu1 %v6499_v62 }
 0x156   :  { %v5484_v0 = vpop.f32.mrb[12].mxu0  ;;  %5808 = vmatprep.subr.bf16.mxu1 %v6501_v1  ;;  %v6538_v1 = vld [vmem:[%s8246_s2 + $0xbf0] sm:$0xff]  }
 0x157   :  { %v5485_v2 = vpop.f32.mrb[13].mxu0  ;;  %v5506_v4 = vpop.f32.mrb[12].mxu1 }
 0x158   :  { %v5486_v5 = vadd.f32 %v5485_v2, %v5484_v0  ;;  %v5487_v6 = vpop.f32.mrb[14].mxu0  ;;  %v5507_v9 = vpop.f32.mrb[13].mxu1  ;;  %5787 = vmatpush3.bf16.msra.mxu0 %v6502_v3  ;;  %v6539_v3 = vld [vmem:[%s8246_s2 + $0xb30] sm:$0xff]  }
 0x159   :  { %v5488_v10 = vpop.f32.mrb[15].mxu0  ;;  %v5508_v12 = vadd.f32 %v5507_v9, %v5506_v4  ;;  %v5509_v13 = vpop.f32.mrb[14].mxu1  ;;  %5788 = vmatprep.subr.bf16.mxu0 %v6504_v8  ;;  %5809 = vmatpush3.bf16.msra.mxu1 %v6503_v7  ;;  %v6541_v6 = vld [vmem:[%s8246_s2 + $0xb78] sm:$0xff]  }
 0x15a   :  { %v3651_v11 = vadd.f32 %v5486_v5, %v7600_v30  ;;  %v5510_v15 = vpop.f32.mrb[15].mxu1  ;;  %5810 = vmatprep.subr.bf16.mxu1 %v6505_v14  ;;  %v6515_v30 = vld [vmem:[%s8246_s2 + $0xb00] sm:$0xff]   ;;  %v6540_v5 = vld [vmem:[%s8246_s2 + $0xbb0] sm:$0xff]   ;;  %v6542_v7 = vld [vmem:[%s8246_s2 + $0xbf8] sm:$0xff]  }
 0x15b   :  { %v6543_v8 = vld [vmem:[%s8246_s2 + $0xb38] sm:$0xff]  }
 0x15c   :  { %v7704_v17 = vadd.f32 %v5508_v12, %v3651_v11  ;;  %5789 = vmatpush3.bf16.msra.mxu0 %v6506_v16  ;;  %v6544_v9 = vld [vmem:[%s8246_s2 + $0xbb8] sm:$0xff]  }
 0x15d   :  { %5790 = vmatprep.subr.bf16.mxu0 %v6508_v19  ;;  %5811 = vmatpush3.bf16.msra.mxu1 %v6507_v18  ;;  %v39_v10 = vld [vmem:[%s8247_s0 + $0x58] sm:$0xff] }
 0x15e   :  { %5812 = vmatprep.subr.bf16.mxu1 %v6509_v20  ;;  %v1014_v11 = vrot.slane %v39_v10, %v6692_v35  ;;  %v1007_v12 = vcombine.high %v39_v10, %v39_v10 }
 0x160   :  { %5791 = vmatpush3.bf16.msra.mxu0 %v6510_v21  ;;  %v1022_v13 = vcombine.high %v1014_v11, %v1014_v11  ;;  %v1021_v14 = vrot.slane %v1007_v12, %v6692_v35 }
 0x161   :  { %5820 = vmatprep.subr.bf16.mxu0 %v6513_v26  ;;  %5813 = vmatpush3.bf16.msra.mxu1 %v6511_v22 }
 0x162   :  { %5842 = vmatprep.subr.bf16.mxu1 %v6514_v27  ;;  %v1023_v15 = vcombine.high %v1021_v14, %v1021_v14 }
 0x163   :  { %4209 = vmatmul.mubr.bf16.vlgmr.msra.gmra.mrb[40].mxu0 %v997_v24 }
 0x164   :  { %5821 = vmatpush3.bf16.msra.mxu0 %v6515_v30  ;;  %4249 = vmatmul.mubr.bf16.vlgmr.msra.gmra.mrb[40].mxu1 %v1004_v29 }
 0x165   :  { %5822 = vmatprep.subr.bf16.mxu0 %v6517_v33  ;;  %5843 = vmatpush3.bf16.msra.mxu1 %v6516_v31 }
 0x166   :  { %5844 = vmatprep.subr.bf16.mxu1 %v6518_v34  ;;  %4288 = vmatprep.mubr.bf16.mxu0 %v1022_v13 }
 0x167   :  { %4328 = vmatprep.mubr.bf16.mxu1 %v1023_v15 }
 0x168   :  { %5823 = vmatpush3.bf16.msra.mxu0 %v6519_v36 }
 0x169   :  { %5824 = vmatprep.subr.bf16.mxu0 %v6521_v38  ;;  %5845 = vmatpush3.bf16.msra.mxu1 %v6520_v37 }
 0x16a   :  { %5846 = vmatprep.subr.bf16.mxu1 %v6522_v39 }
 0x16c   :  { %5825 = vmatpush3.bf16.msra.mxu0 %v6523_v40  ;;  %v6559_v40 = vmov 0.0  }
 0x16d   :  { %5826 = vmatprep.subr.bf16.mxu0 %v6525_v42  ;;  %5847 = vmatpush3.bf16.msra.mxu1 %v6524_v41 }
 0x16e   :  { %5848 = vmatprep.subr.bf16.mxu1 %v6526_v43 }
 0x170   :  { %5827 = vmatpush3.bf16.msra.mxu0 %v6527_v44 }
 0x171   :  { %5828 = vmatprep.subr.bf16.mxu0 %v6529_v46  ;;  %5849 = vmatpush3.bf16.msra.mxu1 %v6528_v45 }
 0x172   :  { %5850 = vmatprep.subr.bf16.mxu1 %v6530_v47 }
 0x174   :  { %5829 = vmatpush3.bf16.msra.mxu0 %v6531_v48 }
 0x175   :  { %5830 = vmatprep.subr.bf16.mxu0 %v6533_v50  ;;  %5851 = vmatpush3.bf16.msra.mxu1 %v6532_v49 }
 0x176   :  { %v5528_v51 = vpop.f32.mrb[16].mxu0  ;;  %5852 = vmatprep.subr.bf16.mxu1 %v6534_v52 }
 0x177   :  { %v5529_v53 = vpop.f32.mrb[17].mxu0  ;;  %v5550_v55 = vpop.f32.mrb[16].mxu1 }
 0x178   :  { %v5530_v56 = vadd.f32 %v5529_v53, %v5528_v51  ;;  %v5531_v57 = vpop.f32.mrb[18].mxu0  ;;  %v5551_v58 = vpop.f32.mrb[17].mxu1  ;;  %5831 = vmatpush3.bf16.msra.mxu0 %v6535_v54  ;;  %v4336_v53 = vld [vmem:[%s8248_s4] sm:$0x3f] }
 0x179   :  { %v5532_v60 = vpop.f32.mrb[19].mxu0  ;;  %v5552_v63 = vadd.f32 %v5551_v58, %v5550_v55  ;;  %v5553_v0 = vpop.f32.mrb[18].mxu1  ;;  %5832 = vmatprep.subr.bf16.mxu0 %v6537_v61  ;;  %5853 = vmatpush3.bf16.msra.mxu1 %v6536_v59 }
 0x17a   :  { %v3731_v62 = vadd.f32 %v5530_v56, %v7704_v17  ;;  %v5554_v2 = vpop.f32.mrb[19].mxu1  ;;  %5854 = vmatprep.subr.bf16.mxu1 %v6538_v1 }
 0x17c   :  { %v3771_v4 = vadd.f32 %v5552_v63, %v3731_v62  ;;  %5833 = vmatpush3.bf16.msra.mxu0 %v6539_v3 }
 0x17d   :  { %5834 = vmatprep.subr.bf16.mxu0 %v6541_v6  ;;  %5855 = vmatpush3.bf16.msra.mxu1 %v6540_v5 }
 0x17e   :  { %5856 = vmatprep.subr.bf16.mxu1 %v6542_v7 }
 0x180   :  { %5835 = vmatpush3.bf16.msra.mxu0 %v6543_v8 }
 0x181   :  { %5857 = vmatpush3.bf16.msra.mxu1 %v6544_v9  ;;  %6008 = vmatprep.subr.mxu0 %v6559_v40 }
 0x182   :  { %6013 = vmatprep.subr.mxu1 %v6559_v40 }
 0x183   :  { %4289 = vmatmul.mubr.bf16.vlgmr.msra.gmra.mrb[44].mxu0 %v1014_v11 }
 0x184   :  { %4329 = vmatmul.mubr.bf16.vlgmr.msra.gmra.mrb[44].mxu1 %v1021_v14  ;;  %6009 = vmatpush3.msk.msra.mxu0 %vm4341_vm0, %v4336_v53 }
 0x185   :  { %6010 = vmatprep.mubr.msk.f32.mxu0 %vm6560_vm1, %v6559_v40  ;;  %6015 = vmatprep.mubr.msk.f32.mxu1 %vm6560_vm1, %v6559_v40  ;;  %v4522_v40 = vld [vmem:[%s8250_s3 + $0x88] sm:$0xff] }
 0x196   :  { %v5572_v16 = vpop.f32.mrb[20].mxu0 }
 0x197   :  { %v5573_v17 = vpop.f32.mrb[21].mxu0  ;;  %v5594_v18 = vpop.f32.mrb[20].mxu1 }
 0x198   :  { %v5574_v19 = vadd.f32 %v5573_v17, %v5572_v16  ;;  %v5575_v20 = vpop.f32.mrb[22].mxu0  ;;  %v5595_v21 = vpop.f32.mrb[21].mxu1 }
 0x199   :  { %v5576_v22 = vpop.f32.mrb[23].mxu0  ;;  %v5596_v24 = vadd.f32 %v5595_v21, %v5594_v18  ;;  %v5597_v25 = vpop.f32.mrb[22].mxu1 }
 0x19a   :  { %v3811_v23 = vadd.f32 %v5574_v19, %v3771_v4  ;;  %v5598_v26 = vpop.f32.mrb[23].mxu1 }
 0x19b   :  { %v4416_v26 = vld [vmem:[%s8249_s5] sm:$0x7] }
 0x19c   :  { %v3851_v27 = vadd.f32 %v5596_v24, %v3811_v23  ;;  %6014 = vmatpush3.msk.msra.mxu1 %vm4421_vm2, %v4416_v26  ;;  %v4585_v26 = vld [vmem:[%s8250_s3 + $0x280] sm:$0xff] }
 0x1b6   :  { %v5616_v28 = vpop.f32.mrb[24].mxu0 }
 0x1b7   :  { %v5617_v35 = vpop.f32.mrb[25].mxu0  ;;  %v5638_v29 = vpop.f32.mrb[24].mxu1 }
 0x1b8   :  { %v5618_v30 = vadd.f32 %v5617_v35, %v5616_v28  ;;  %v5619_v31 = vpop.f32.mrb[26].mxu0  ;;  %v5639_v32 = vpop.f32.mrb[25].mxu1 }
 0x1b9   :  { %v5620_v33 = vpop.f32.mrb[27].mxu0  ;;  %v5640_v36 = vadd.f32 %v5639_v32, %v5638_v29  ;;  %v5641_v37 = vpop.f32.mrb[26].mxu1 }
 0x1ba   :  { %v3891_v34 = vadd.f32 %v5618_v30, %v3851_v27  ;;  %v5642_v38 = vpop.f32.mrb[27].mxu1 }
 0x1bc   :  { %v3931_v39 = vadd.f32 %v5640_v36, %v3891_v34 }
 0x1d6   :  { %v5660_v41 = vpop.f32.mrb[28].mxu0 }
 0x1d7   :  { %v5661_v42 = vpop.f32.mrb[29].mxu0  ;;  %v5682_v43 = vpop.f32.mrb[28].mxu1 }
 0x1d8   :  { %v5662_v44 = vadd.f32 %v5661_v42, %v5660_v41  ;;  %v5663_v45 = vpop.f32.mrb[30].mxu0  ;;  %v5683_v46 = vpop.f32.mrb[29].mxu1  ;;  %v4505_v41 = vld [vmem:[%s8250_s3] sm:$0xff] }
 0x1d9   :  { %v5664_v47 = vpop.f32.mrb[31].mxu0  ;;  %v5684_v49 = vadd.f32 %v5683_v46, %v5682_v43  ;;  %v5685_v50 = vpop.f32.mrb[30].mxu1  ;;  %v4506_v43 = vld [vmem:[%s8250_s3 + $0x8] sm:$0xff] }
 0x1da   :  { %v3971_v48 = vadd.f32 %v5662_v44, %v3931_v39  ;;  %v5686_v51 = vpop.f32.mrb[31].mxu1  ;;  %v4521_v39 = vld [vmem:[%s8250_s3 + $0x80] sm:$0xff]  ;;  %v4554_v45 = vld [vmem:[%s8250_s3 + $0x188] sm:$0xff]  ;;  %v6020_v46 = vpack.c.bf16 %v4506_v43, %v4505_v41  ;;  %v4507_v50 = vld [vmem:[%s8250_s3 + $0x10] sm:$0xff] }
 0x1db   :  { %v6018_v42 = vpack.c.bf16 %v4522_v40, %v4521_v39  ;;  %v4553_v44 = vld [vmem:[%s8250_s3 + $0x180] sm:$0xff]  ;;  %v4508_v51 = vld [vmem:[%s8250_s3 + $0x18] sm:$0xff]  ;;  %v4590_v41 = vld [vmem:[%s8250_s3 + $0x2a8] sm:$0xff] }
 0x1dc   :  { %v4011_v52 = vadd.f32 %v5684_v49, %v3971_v48  ;;  %v6050_v47 = vpack.c.bf16 %v4554_v45, %v4553_v44  ;;  %v4523_v48 = vld [vmem:[%s8250_s3 + $0x90] sm:$0xff]  ;;  %v4524_v49 = vld [vmem:[%s8250_s3 + $0x98] sm:$0xff]  ;;  %v6024_v53 = vpack.c.bf16 %v4508_v51, %v4507_v50  ;;  %v4589_v40 = vld [vmem:[%s8250_s3 + $0x2a0] sm:$0xff] }
 0x1dd   :  { %6019 = vmatprep.subr.bf16.mxu0 %v6018_v42  ;;  %v6090_v42 = vpack.c.bf16 %v4590_v41, %v4589_v40  ;;  %v4573_v43 = vld [vmem:[%s8250_s3 + $0x220] sm:$0xff]  ;;  %v4574_v44 = vld [vmem:[%s8250_s3 + $0x228] sm:$0xff]  ;;  %v4576_v50 = vld [vmem:[%s8250_s3 + $0x238] sm:$0xff] }
 0x1de   :  { %6051 = vmatprep.subr.bf16.mxu1 %v6050_v47  ;;  %v6092_v45 = vpack.c.bf16 %v4574_v44, %v4573_v43  ;;  %v4592_v47 = vld [vmem:[%s8250_s3 + $0x2b8] sm:$0xff]  ;;  %v4562_v40 = vld [vmem:[%s8250_s3 + $0x1c8] sm:$0xff]  ;;  %v4545_v43 = vld [vmem:[%s8250_s3 + $0x140] sm:$0xff] }
 0x1df   :  { %v4546_v44 = vld [vmem:[%s8250_s3 + $0x148] sm:$0xff] }
 0x1f6   :  { %v5704_v54 = vpop.f32.mrb[32].mxu0 }
 0x1f7   :  { %v5705_v55 = vpop.f32.mrb[33].mxu0  ;;  %v5726_v56 = vpop.f32.mrb[32].mxu1 }
 0x1f8   :  { %v5706_v57 = vadd.f32 %v5705_v55, %v5704_v54  ;;  %v5707_v58 = vpop.f32.mrb[34].mxu0  ;;  %v5727_v59 = vpop.f32.mrb[33].mxu1  ;;  %v4525_v54 = vld [vmem:[%s8250_s3 + $0xa0] sm:$0xff]  ;;  %v4526_v55 = vld [vmem:[%s8250_s3 + $0xa8] sm:$0xff] }
 0x1f9   :  { %v5708_v60 = vpop.f32.mrb[35].mxu0  ;;  %v5728_v62 = vadd.f32 %v5727_v59, %v5726_v56  ;;  %v5729_v63 = vpop.f32.mrb[34].mxu1  ;;  %v6026_v56 = vpack.c.bf16 %v4526_v55, %v4525_v54  ;;  %v4510_v58 = vld [vmem:[%s8250_s3 + $0x28] sm:$0xff]  ;;  %v4577_v55 = vld [vmem:[%s8250_s3 + $0x240] sm:$0xff] }
 0x1fa   :  { %v4051_v61 = vadd.f32 %v5706_v57, %v4011_v52  ;;  %v5730_v0 = vpop.f32.mrb[35].mxu1  ;;  %v6022_v52 = vpack.c.bf16 %v4524_v49, %v4523_v48  ;;  %v4509_v57 = vld [vmem:[%s8250_s3 + $0x20] sm:$0xff]  ;;  %v4527_v60 = vld [vmem:[%s8250_s3 + $0xb0] sm:$0xff] }
 0x1fb   :  { %v6028_v59 = vpack.c.bf16 %v4510_v58, %v4509_v57  ;;  %v4511_v63 = vld [vmem:[%s8250_s3 + $0x30] sm:$0xff]  ;;  %v4512_v0 = vld [vmem:[%s8250_s3 + $0x38] sm:$0xff] }
 0x1fc   :  { %v4091_v1 = vadd.f32 %v5728_v62, %v4051_v61  ;;  %v4528_v61 = vld [vmem:[%s8250_s3 + $0xb8] sm:$0xff]  ;;  %v4575_v49 = vld [vmem:[%s8250_s3 + $0x230] sm:$0xff] }
 0x1fd   :  { %v6030_v62 = vpack.c.bf16 %v4528_v61, %v4527_v60  ;;  %v6096_v51 = vpack.c.bf16 %v4576_v50, %v4575_v49  ;;  %v4595_v58 = vld [vmem:[%s8250_s3 + $0x2d0] sm:$0xff]  ;;  %v4548_v50 = vld [vmem:[%s8250_s3 + $0x158] sm:$0xff] }
 0x1fe   :  { %v4579_v61 = vld [vmem:[%s8250_s3 + $0x250] sm:$0xff] }
 0x1ff   :  { %v4547_v49 = vld [vmem:[%s8250_s3 + $0x150] sm:$0xff] }
 0x216   :  { %v5748_v2 = vpop.f32.mrb[36].mxu0 }
 0x217   :  { %v5749_v3 = vpop.f32.mrb[37].mxu0  ;;  %v5770_v4 = vpop.f32.mrb[36].mxu1 }
 0x218   :  { %v5750_v5 = vadd.f32 %v5749_v3, %v5748_v2  ;;  %v5751_v6 = vpop.f32.mrb[38].mxu0  ;;  %v5771_v7 = vpop.f32.mrb[37].mxu1  ;;  %v4529_v2 = vld [vmem:[%s8250_s3 + $0xc0] sm:$0xff]  ;;  %v4530_v3 = vld [vmem:[%s8250_s3 + $0xc8] sm:$0xff] }
 0x219   :  { %v5752_v8 = vpop.f32.mrb[39].mxu0  ;;  %v5772_v10 = vadd.f32 %v5771_v7, %v5770_v4  ;;  %v5773_v11 = vpop.f32.mrb[38].mxu1  ;;  %v6034_v4 = vpack.c.bf16 %v4530_v3, %v4529_v2  ;;  %v4514_v6 = vld [vmem:[%s8250_s3 + $0x48] sm:$0xff]  ;;  %v4581_v3 = vld [vmem:[%s8250_s3 + $0x260] sm:$0xff] }
 0x21a   :  { %v4131_v9 = vadd.f32 %v5750_v5, %v4091_v1  ;;  %v5774_v12 = vpop.f32.mrb[39].mxu1  ;;  %v6032_v1 = vpack.c.bf16 %v4512_v0, %v4511_v63  ;;  %v4513_v5 = vld [vmem:[%s8250_s3 + $0x40] sm:$0xff]  ;;  %v4531_v8 = vld [vmem:[%s8250_s3 + $0xd0] sm:$0xff] }
 0x21b   :  { %v6036_v7 = vpack.c.bf16 %v4514_v6, %v4513_v5  ;;  %v4515_v11 = vld [vmem:[%s8250_s3 + $0x50] sm:$0xff]  ;;  %v4516_v12 = vld [vmem:[%s8250_s3 + $0x58] sm:$0xff]  ;;  %v4597_v0 = vld [vmem:[%s8250_s3 + $0x2e0] sm:$0xff] }
 0x21c   :  { %v4171_v13 = vadd.f32 %v5772_v10, %v4131_v9  ;;  %v4532_v9 = vld [vmem:[%s8250_s3 + $0xd8] sm:$0xff]  ;;  %v4599_v6 = vld [vmem:[%s8250_s3 + $0x2f0] sm:$0xff] }
 0x21d   :  { %v6038_v10 = vpack.c.bf16 %v4532_v9, %v4531_v8  ;;  %v4583_v9 = vld [vmem:[%s8250_s3 + $0x270] sm:$0xff] }
 0x236   :  { %v5792_v14 = vpop.f32.mrb[40].mxu0 }
 0x237   :  { %v5793_v15 = vpop.f32.mrb[41].mxu0  ;;  %v5814_v16 = vpop.f32.mrb[40].mxu1 }
 0x238   :  { %v5794_v17 = vadd.f32 %v5793_v15, %v5792_v14  ;;  %v5795_v18 = vpop.f32.mrb[42].mxu0  ;;  %v5815_v19 = vpop.f32.mrb[41].mxu1  ;;  %v4533_v14 = vld [vmem:[%s8250_s3 + $0xe0] sm:$0xff]  ;;  %v4534_v15 = vld [vmem:[%s8250_s3 + $0xe8] sm:$0xff] }
 0x239   :  { %v5796_v20 = vpop.f32.mrb[43].mxu0  ;;  %v5816_v22 = vadd.f32 %v5815_v19, %v5814_v16  ;;  %v5817_v23 = vpop.f32.mrb[42].mxu1  ;;  %v6042_v16 = vpack.c.bf16 %v4534_v15, %v4533_v14  ;;  %v4518_v18 = vld [vmem:[%s8250_s3 + $0x68] sm:$0xff]  ;;  %v4537_v14 = vld [vmem:[%s8250_s3 + $0x100] sm:$0xff] }
 0x23a   :  { %v4211_v21 = vadd.f32 %v5794_v17, %v4171_v13  ;;  %v5818_v24 = vpop.f32.mrb[43].mxu1  ;;  %v6040_v13 = vpack.c.bf16 %v4516_v12, %v4515_v11  ;;  %v4517_v17 = vld [vmem:[%s8250_s3 + $0x60] sm:$0xff]  ;;  %v4535_v20 = vld [vmem:[%s8250_s3 + $0xf0] sm:$0xff]  ;;  %v4538_v15 = vld [vmem:[%s8250_s3 + $0x108] sm:$0xff] }
 0x23b   :  { %v6044_v19 = vpack.c.bf16 %v4518_v18, %v4517_v17  ;;  %v4519_v23 = vld [vmem:[%s8250_s3 + $0x70] sm:$0xff]  ;;  %v4520_v24 = vld [vmem:[%s8250_s3 + $0x78] sm:$0xff] }
 0x23c   :  { %v4251_v25 = vadd.f32 %v5816_v22, %v4211_v21  ;;  %v4536_v21 = vld [vmem:[%s8250_s3 + $0xf8] sm:$0xff]  ;;  %v4503_v11 = vld [vmem:[%s8251_s1 + $0x10] sm:$0xff] }
 0x23d   :  { %v6046_v22 = vpack.c.bf16 %v4536_v21, %v4535_v20  ;;  %v4647_v12 = vcombine.high %v4503_v11, %v4503_v11  ;;  %v4555_v17 = vld [vmem:[%s8250_s3 + $0x190] sm:$0xff]  ;;  %v4556_v18 = vld [vmem:[%s8250_s3 + $0x198] sm:$0xff]  ;;  %v6052_v20 = vpack.c.bf16 %v4538_v15, %v4537_v14  ;;  %v4622_v14 = vld [vmem:[%s8250_s3 + $0x3a8] sm:$0xff] }
 0x256   :  { %v5836_v27 = vpop.f32.mrb[44].mxu0 }
 0x257   :  { %v5837_v28 = vpop.f32.mrb[45].mxu0  ;;  %v5858_v35 = vpop.f32.mrb[44].mxu1 }
 0x258   :  { %v5838_v29 = vadd.f32 %v5837_v28, %v5836_v27  ;;  %v5839_v30 = vpop.f32.mrb[46].mxu0  ;;  %v5859_v31 = vpop.f32.mrb[45].mxu1  ;;  %v4586_v27 = vld [vmem:[%s8250_s3 + $0x288] sm:$0xff]  ;;  %v4501_v28 = vld [vmem:[%s8251_s1] sm:$0xff] }
 0x259   :  { %v5840_v32 = vpop.f32.mrb[47].mxu0  ;;  %v5860_v34 = vadd.f32 %v5859_v31, %v5858_v35  ;;  %v5861_v36 = vpop.f32.mrb[46].mxu1  ;;  %v6082_v35 = vpack.c.bf16 %v4586_v27, %v4585_v26  ;;  %v4570_v30 = vld [vmem:[%s8250_s3 + $0x208] sm:$0xff]  ;;  %v4645_v31 = vcombine.high %v4501_v28, %v4501_v28  ;;  %v4540_v26 = vld [vmem:[%s8250_s3 + $0x118] sm:$0xff]  ;;  %v4557_v27 = vld [vmem:[%s8250_s3 + $0x1a0] sm:$0xff] }
 0x25a   :  { %v4291_v33 = vadd.f32 %v5838_v29, %v4251_v25  ;;  %v5862_v37 = vpop.f32.mrb[47].mxu1  ;;  %v6048_v25 = vpack.c.bf16 %v4520_v24, %v4519_v23  ;;  %v4569_v29 = vld [vmem:[%s8250_s3 + $0x200] sm:$0xff]  ;;  %v6054_v24 = vpack.c.bf16 %v4556_v18, %v4555_v17 }
 0x25b   :  { %v6084_v32 = vpack.c.bf16 %v4570_v30, %v4569_v29  ;;  %v4571_v37 = vld [vmem:[%s8250_s3 + $0x210] sm:$0xff]  ;;  %v4541_v30 = vld [vmem:[%s8250_s3 + $0x120] sm:$0xff] }
 0x25c   :  { %v4331_v38 = vadd.f32 %v5860_v34, %v4291_v33  ;;  %v4587_v33 = vld [vmem:[%s8250_s3 + $0x290] sm:$0xff]  ;;  %v4588_v34 = vld [vmem:[%s8250_s3 + $0x298] sm:$0xff]  ;;  %v4605_v18 = vld [vmem:[%s8250_s3 + $0x320] sm:$0xff] }
 0x25d   :  { %v6086_v36 = vpack.c.bf16 %v4588_v34, %v4587_v33  ;;  %v4560_v33 = vld [vmem:[%s8250_s3 + $0x1b8] sm:$0xff] }
 0x25e   :  { %4633 = vrot.lane.b32.xlu0 %v4331_v38, %s6561_s12  ;;  %6011 = vmatmul.mubr.msk.f32.vlgmr.msra.gmra.mrb[48].mxu0 %vm4337_vm3, %v4331_v38  ;;  %v4572_v38 = vld [vmem:[%s8250_s3 + $0x218] sm:$0xff] }
 0x25f   :  { %6021 = vmatpush3.bf16.msra.mxu0 %v6020_v46  ;;  %4717 = vmatprep.mubr.f32.mxu0 %v4645_v31  ;;  %v6088_v39 = vpack.c.bf16 %v4572_v38, %v4571_v37  ;;  %v4591_v46 = vld [vmem:[%s8250_s3 + $0x2b0] sm:$0xff]  ;;  %v4542_v31 = vld [vmem:[%s8250_s3 + $0x128] sm:$0xff]  ;;  %v4544_v38 = vld [vmem:[%s8250_s3 + $0x138] sm:$0xff] }
 0x260   :  { %6023 = vmatprep.subr.bf16.mxu0 %v6022_v52  ;;  %v6094_v48 = vpack.c.bf16 %v4592_v47, %v4591_v46  ;;  %v4593_v52 = vld [vmem:[%s8250_s3 + $0x2c0] sm:$0xff]  ;;  %v6060_v34 = vpack.c.bf16 %v4542_v31, %v4541_v30  ;;  %v4543_v37 = vld [vmem:[%s8250_s3 + $0x130] sm:$0xff]  ;;  %v4564_v46 = vld [vmem:[%s8250_s3 + $0x1d8] sm:$0xff]  ;;  %v6068_v47 = vpack.c.bf16 %v4546_v44, %v4545_v43 }
 0x261   :  { %v6064_v41 = vpack.c.bf16 %v4544_v38, %v4543_v37  ;;  %v4627_v30 = vld [vmem:[%s8250_s3 + $0x3d0] sm:$0xff]  ;;  %v4628_v31 = vld [vmem:[%s8250_s3 + $0x3d8] sm:$0xff]  ;;  %v4629_v37 = vld [vmem:[%s8250_s3 + $0x3e0] sm:$0xff] }
 0x262   :  { %v4630_v38 = vld [vmem:[%s8250_s3 + $0x3e8] sm:$0xff]  ;;  %v4631_v43 = vld [vmem:[%s8250_s3 + $0x3f0] sm:$0xff]  ;;  %v4632_v44 = vld [vmem:[%s8250_s3 + $0x3f8] sm:$0xff] }
 0x263   :  { %6025 = vmatpush3.bf16.msra.mxu0 %v6024_v53  ;;  %v4594_v53 = vld [vmem:[%s8250_s3 + $0x2c8] sm:$0xff] }
 0x264   :  { %6027 = vmatprep.subr.bf16.mxu0 %v6026_v56  ;;  %v6098_v54 = vpack.c.bf16 %v4594_v53, %v4593_v52  ;;  %v4578_v56 = vld [vmem:[%s8250_s3 + $0x248] sm:$0xff]  ;;  %v6072_v53 = vpack.c.bf16 %v4548_v50, %v4547_v49 }
 0x265   :  { %v6100_v57 = vpack.c.bf16 %v4578_v56, %v4577_v55  ;;  %v4566_v52 = vld [vmem:[%s8250_s3 + $0x1e8] sm:$0xff]  ;;  %v4549_v55 = vld [vmem:[%s8250_s3 + $0x160] sm:$0xff] }
 0x266   :  { %v4550_v56 = vld [vmem:[%s8250_s3 + $0x168] sm:$0xff] }
 0x267   :  { %6029 = vmatpush3.bf16.msra.mxu0 %v6028_v59  ;;  %v4596_v59 = vld [vmem:[%s8250_s3 + $0x2d8] sm:$0xff] }
 0x268   :  { %6031 = vmatprep.subr.bf16.mxu0 %v6030_v62  ;;  %v6102_v60 = vpack.c.bf16 %v4596_v59, %v4595_v58  ;;  %v4580_v62 = vld [vmem:[%s8250_s3 + $0x258] sm:$0xff]  ;;  %v6076_v59 = vpack.c.bf16 %v4550_v56, %v4549_v55 }
 0x269   :  { %v6104_v63 = vpack.c.bf16 %v4580_v62, %v4579_v61  ;;  %v4568_v58 = vld [vmem:[%s8250_s3 + $0x1f8] sm:$0xff]  ;;  %v4551_v61 = vld [vmem:[%s8250_s3 + $0x170] sm:$0xff] }
 0x26a   :  { %v4552_v62 = vld [vmem:[%s8250_s3 + $0x178] sm:$0xff] }
 0x26b   :  { %6033 = vmatpush3.bf16.msra.mxu0 %v6032_v1  ;;  %v4598_v1 = vld [vmem:[%s8250_s3 + $0x2e8] sm:$0xff] }
 0x26c   :  { %6035 = vmatprep.subr.bf16.mxu0 %v6034_v4  ;;  %v6106_v2 = vpack.c.bf16 %v4598_v1, %v4597_v0  ;;  %v4582_v4 = vld [vmem:[%s8250_s3 + $0x268] sm:$0xff]  ;;  %v6080_v1 = vpack.c.bf16 %v4552_v62, %v4551_v61 }
 0x26d   :  { %v6108_v5 = vpack.c.bf16 %v4582_v4, %v4581_v3  ;;  %v4618_v0 = vld [vmem:[%s8250_s3 + $0x388] sm:$0xff]  ;;  %v4601_v3 = vld [vmem:[%s8250_s3 + $0x300] sm:$0xff] }
 0x26e   :  { %v4602_v4 = vld [vmem:[%s8250_s3 + $0x308] sm:$0xff] }
 0x26f   :  { %6037 = vmatpush3.bf16.msra.mxu0 %v6036_v7  ;;  %v4600_v7 = vld [vmem:[%s8250_s3 + $0x2f8] sm:$0xff] }
 0x270   :  { %6039 = vmatprep.subr.bf16.mxu0 %v6038_v10  ;;  %v6110_v8 = vpack.c.bf16 %v4600_v7, %v4599_v6  ;;  %v4584_v10 = vld [vmem:[%s8250_s3 + $0x278] sm:$0xff]  ;;  %v4619_v6 = vld [vmem:[%s8250_s3 + $0x390] sm:$0xff] }
 0x271   :  { %v4620_v7 = vld [vmem:[%s8250_s3 + $0x398] sm:$0xff] }
 0x273   :  { %6041 = vmatpush3.bf16.msra.mxu0 %v6040_v13  ;;  %v6112_v13 = vpack.c.bf16 %v4584_v10, %v4583_v9  ;;  %v6118_v10 = vpack.c.bf16 %v4620_v7, %v4619_v6 }
 0x274   :  { %6043 = vmatprep.subr.bf16.mxu0 %v6042_v16  ;;  %v8047_v16 = vld [vmem:[%s8251_s1 + $0x8] sm:$0xff] }
 0x275   :  { %v4646_v21 = vcombine.high %v8047_v16, %v8047_v16 }
 0x277   :  { %6045 = vmatpush3.bf16.msra.mxu0 %v6044_v19 }
 0x278   :  { %6047 = vmatprep.subr.bf16.mxu0 %v6046_v22 }
 0x27b   :  { %6049 = vmatpush3.bf16.msra.mxu0 %v6048_v25  ;;  %v4539_v25 = vld [vmem:[%s8250_s3 + $0x110] sm:$0xff] }
 0x27c   :  { %6083 = vmatprep.subr.bf16.mxu0 %v6082_v35  ;;  %v6056_v35 = vpack.c.bf16 %v4540_v26, %v4539_v25  ;;  %v4625_v25 = vld [vmem:[%s8250_s3 + $0x3c0] sm:$0xff]  ;;  %v4626_v26 = vld [vmem:[%s8250_s3 + $0x3c8] sm:$0xff] }
 0x27e   :  { %4718 = vmatmul.mubr.f32.vlgmr.msra.gmra.mrb[50].mxu0 %v4501_v28  ;;  %v4558_v28 = vld [vmem:[%s8250_s3 + $0x1a8] sm:$0xff] }
 0x27f   :  { %6085 = vmatpush3.bf16.msra.mxu0 %v6084_v32  ;;  %4857 = vmatprep.mubr.f32.mxu0 %v4647_v12  ;;  %v6058_v29 = vpack.c.bf16 %v4558_v28, %v4557_v27  ;;  %v4559_v32 = vld [vmem:[%s8250_s3 + $0x1b0] sm:$0xff]  ;;  %v4604_v12 = vld [vmem:[%s8250_s3 + $0x318] sm:$0xff]  ;;  %v6130_v28 = vpack.c.bf16 %v4626_v26, %v4625_v25 }
 0x280   :  { %6087 = vmatprep.subr.bf16.mxu0 %v6086_v36  ;;  %v6062_v36 = vpack.c.bf16 %v4560_v33, %v4559_v32  ;;  %v6134_v33 = vpack.c.bf16 %v4628_v31, %v4627_v30 }
 0x283   :  { %6089 = vmatpush3.bf16.msra.mxu0 %v6088_v39  ;;  %v4561_v39 = vld [vmem:[%s8250_s3 + $0x1c0] sm:$0xff] }
 0x284   :  { %6091 = vmatprep.subr.bf16.mxu0 %v6090_v42  ;;  %v6066_v42 = vpack.c.bf16 %v4562_v40, %v4561_v39  ;;  %v6138_v40 = vpack.c.bf16 %v4630_v38, %v4629_v37 }
 0x287   :  { %6093 = vmatpush3.bf16.msra.mxu0 %v6092_v45  ;;  %v4563_v45 = vld [vmem:[%s8250_s3 + $0x1d0] sm:$0xff] }
 0x288   :  { %6095 = vmatprep.subr.bf16.mxu0 %v6094_v48  ;;  %v6070_v48 = vpack.c.bf16 %v4564_v46, %v4563_v45  ;;  %v6142_v46 = vpack.c.bf16 %v4632_v44, %v4631_v43 }
 0x28b   :  { %6097 = vmatpush3.bf16.msra.mxu0 %v6096_v51  ;;  %v4565_v51 = vld [vmem:[%s8250_s3 + $0x1e0] sm:$0xff] }
 0x28c   :  { %6099 = vmatprep.subr.bf16.mxu0 %v6098_v54  ;;  %v6074_v54 = vpack.c.bf16 %v4566_v52, %v4565_v51 }
 0x28f   :  { %6101 = vmatpush3.bf16.msra.mxu0 %v6100_v57  ;;  %v4567_v57 = vld [vmem:[%s8250_s3 + $0x1f0] sm:$0xff] }
 0x290   :  { %6103 = vmatprep.subr.bf16.mxu0 %v6102_v60  ;;  %v6078_v60 = vpack.c.bf16 %v4568_v58, %v4567_v57 }
 0x293   :  { %6105 = vmatpush3.bf16.msra.mxu0 %v6104_v63  ;;  %v4617_v63 = vld [vmem:[%s8250_s3 + $0x380] sm:$0xff] }
 0x294   :  { %6107 = vmatprep.subr.bf16.mxu0 %v6106_v2  ;;  %v6114_v2 = vpack.c.bf16 %v4618_v0, %v4617_v63 }
 0x297   :  { %6109 = vmatpush3.bf16.msra.mxu0 %v6108_v5  ;;  %v8150_v5 = vld [vmem:[%s8251_s1 + $0x18] sm:$0xff] }
 0x298   :  { %6111 = vmatprep.subr.bf16.mxu0 %v6110_v8  ;;  %v6116_v8 = vpack.c.bf16 %v4602_v4, %v4601_v3  ;;  %v4648_v9 = vcombine.high %v8150_v5, %v8150_v5 }
 0x29b   :  { %6113 = vmatpush3.bf16.msra.mxu0 %v6112_v13  ;;  %v4621_v13 = vld [vmem:[%s8250_s3 + $0x3a0] sm:$0xff] }
 0x29c   :  { %v6122_v17 = vpack.c.bf16 %v4622_v14, %v4621_v13 }
 0x29e   :  { %4858 = vmatmul.mubr.f32.vlgmr.msra.gmra.mrb[52].mxu0 %v4503_v11  ;;  %v4603_v11 = vld [vmem:[%s8250_s3 + $0x310] sm:$0xff] }
 0x29f   :  { %v6120_v15 = vpack.c.bf16 %v4604_v12, %v4603_v11  ;;  %v4934_v12 = vstv %s8252_s6 }
 0x331   :  { %v4411_v19 = vpop.f32.mrb[48].mxu0 }
 0x332   :  { %v4415_v22 = vmax.f32 %v4411_v19, 0.0  ;;  %v6012_v23 = vpop.f32.mrb[49].mxu0  ;;  %v4606_v19 = vld [vmem:[%s8250_s3 + $0x328] sm:$0xff] }
 0x333   :  { %v4607_v23 = vld [vmem:[%s8250_s3 + $0x330] sm:$0xff] }
 0x334   :  { %6016 = vmatmul.mubr.msk.f32.vlgmr.msra.gmra.mrb[48].mxu1 %vm4417_vm4, %v4415_v22 }
 0x335   :  { %6053 = vmatpush3.bf16.msra.mxu1 %v6052_v20  ;;  %4787 = vmatprep.mubr.f32.mxu1 %v4646_v21  ;;  %v4623_v20 = vld [vmem:[%s8250_s3 + $0x3b0] sm:$0xff]  ;;  %v6124_v21 = vpack.c.bf16 %v4606_v19, %v4605_v18 }
 0x336   :  { %6055 = vmatprep.subr.bf16.mxu1 %v6054_v24  ;;  %v4608_v24 = vld [vmem:[%s8250_s3 + $0x338] sm:$0xff] }
 0x337   :  { %v6128_v27 = vpack.c.bf16 %v4608_v24, %v4607_v23 }
 0x339   :  { %6057 = vmatpush3.bf16.msra.mxu1 %v6056_v35  ;;  %v4609_v35 = vld [vmem:[%s8250_s3 + $0x340] sm:$0xff] }
 0x33a   :  { %6059 = vmatprep.subr.bf16.mxu1 %v6058_v29  ;;  %v4610_v29 = vld [vmem:[%s8250_s3 + $0x348] sm:$0xff] }
 0x33b   :  { %v6132_v32 = vpack.c.bf16 %v4610_v29, %v4609_v35 }
 0x33d   :  { %6061 = vmatpush3.bf16.msra.mxu1 %v6060_v34  ;;  %v4611_v34 = vld [vmem:[%s8250_s3 + $0x350] sm:$0xff] }
 0x33e   :  { %6063 = vmatprep.subr.bf16.mxu1 %v6062_v36  ;;  %v4612_v36 = vld [vmem:[%s8250_s3 + $0x358] sm:$0xff] }
 0x33f   :  { %v6136_v39 = vpack.c.bf16 %v4612_v36, %v4611_v34 }
 0x341   :  { %6065 = vmatpush3.bf16.msra.mxu1 %v6064_v41  ;;  %v4613_v41 = vld [vmem:[%s8250_s3 + $0x360] sm:$0xff] }
 0x342   :  { %6067 = vmatprep.subr.bf16.mxu1 %v6066_v42  ;;  %v4614_v42 = vld [vmem:[%s8250_s3 + $0x368] sm:$0xff] }
 0x343   :  { %v6140_v45 = vpack.c.bf16 %v4614_v42, %v4613_v41 }
 0x345   :  { %6069 = vmatpush3.bf16.msra.mxu1 %v6068_v47  ;;  %v4615_v47 = vld [vmem:[%s8250_s3 + $0x370] sm:$0xff] }
 0x346   :  { %6071 = vmatprep.subr.bf16.mxu1 %v6070_v48  ;;  %v4616_v48 = vld [vmem:[%s8250_s3 + $0x378] sm:$0xff] }
 0x347   :  { %v6144_v49 = vpack.c.bf16 %v4616_v48, %v4615_v47 }
 0x349   :  { %6073 = vmatpush3.bf16.msra.mxu1 %v6072_v53 }
 0x34a   :  { %6075 = vmatprep.subr.bf16.mxu1 %v6074_v54 }
 0x34d   :  { %6077 = vmatpush3.bf16.msra.mxu1 %v6076_v59 }
 0x34e   :  { %6079 = vmatprep.subr.bf16.mxu1 %v6078_v60  ;;  %v4634_v60 = vpop.permute.xlu0 %4633 }
 0x351   :  { %6081 = vmatpush3.bf16.msra.mxu1 %v6080_v1  ;;  %v5900_v50 = vpop.f32.mrb[50].mxu0 }
 0x352   :  { %6115 = vmatprep.subr.bf16.mxu1 %v6114_v2  ;;  %v5901_v51 = vpop.f32.mrb[51].mxu0 }
 0x353   :  { %v5902_v52 = vadd.f32 %v5901_v51, %v5900_v50 }
 0x354   :  { %4788 = vmatmul.mubr.f32.vlgmr.msra.gmra.mrb[50].mxu1 %v8047_v16  ;;  %v4624_v16 = vld [vmem:[%s8250_s3 + $0x3b8] sm:$0xff] }
 0x355   :  { %6117 = vmatpush3.bf16.msra.mxu1 %v6116_v8  ;;  %4927 = vmatprep.mubr.f32.mxu1 %v4648_v9  ;;  %v6126_v22 = vpack.c.bf16 %v4624_v16, %v4623_v20 }
 0x356   :  { %6119 = vmatprep.subr.bf16.mxu1 %v6118_v10 }
 0x359   :  { %6121 = vmatpush3.bf16.msra.mxu1 %v6120_v15 }
 0x35a   :  { %6123 = vmatprep.subr.bf16.mxu1 %v6122_v17 }
 0x35d   :  { %6125 = vmatpush3.bf16.msra.mxu1 %v6124_v21 }
 0x35e   :  { %6127 = vmatprep.subr.bf16.mxu1 %v6126_v22 }
 0x361   :  { %6129 = vmatpush3.bf16.msra.mxu1 %v6128_v27 }
 0x362   :  { %6131 = vmatprep.subr.bf16.mxu1 %v6130_v28 }
 0x365   :  { %6133 = vmatpush3.bf16.msra.mxu1 %v6132_v32 }
 0x366   :  { %6135 = vmatprep.subr.bf16.mxu1 %v6134_v33 }
 0x369   :  { %6137 = vmatpush3.bf16.msra.mxu1 %v6136_v39 }
 0x36a   :  { %6139 = vmatprep.subr.bf16.mxu1 %v6138_v40 }
 0x36d   :  { %6141 = vmatpush3.bf16.msra.mxu1 %v6140_v45 }
 0x36e   :  { %6143 = vmatprep.subr.bf16.mxu1 %v6142_v46 }
 0x371   :  { %6145 = vmatpush3.bf16.msra.mxu1 %v6144_v49  ;;  %v5970_v2 = vpop.f32.mrb[52].mxu0 }
 0x372   :  { %v5971_v3 = vpop.f32.mrb[53].mxu0 }
 0x373   :  { %v5972_v4 = vadd.f32 %v5971_v3, %v5970_v2 }
 0x374   :  { %4928 = vmatmul.mubr.f32.vlgmr.msra.gmra.mrb[52].mxu1 %v8150_v5 }
 0x407   :  { %v4491_v53 = vpop.f32.mrb[48].mxu1 }
 0x408   :  { %v4495_v54 = vsub.f32 0.0, %v4491_v53  ;;  %v6017_v55 = vpop.f32.mrb[49].mxu1 }
 0x40a   :  { %v4496_v56 = vmul.f32 1.442695, %v4495_v54 }
 0x40c   :  { %6550 = vpow2.f32 %v4496_v56 }
 0x416   :  { %v6551_v57 = vpop.eup %6550 }
 0x417   :  { %v4498_v58 = vadd.f32 1.0, %v6551_v57 }
 0x419   :  { %6552 = vrcp.f32 %v4498_v58 }
 0x423   :  { %v6553_v59 = vpop.eup %6552 }
 0x424   :  { %v4636_v61 = vmul.f32 %v6553_v59, %v4634_v60 }
 0x426   :  { %v4638_v62 = vsel %vm4637_vm5, %v4636_v61, 0.0 }
 0x427   :  { %4639 = vadd.xlane.f32.xlu0 %v4638_v62  ;;  %v5935_v63 = vpop.f32.mrb[50].mxu1 }
 0x428   :  { %v5936_v0 = vpop.f32.mrb[51].mxu1 }
 0x429   :  { %v5937_v1 = vadd.f32 %v5936_v0, %v5935_v63 }
 0x447   :  { %v6005_v5 = vpop.f32.mrb[52].mxu1 }
 0x448   :  { %v6006_v6 = vpop.f32.mrb[53].mxu1 }
 0x449   :  { %v6007_v7 = vadd.f32 %v6006_v6, %v6005_v5 }
 0x4b4   :  { %v4640_v8 = vpop.xlane.xlu0 %4639 }
 0x4b5   :  { %v4720_v9 = vadd.f32 %v5902_v52, %v4640_v8 }
 0x4b7   :  { %v4790_v10 = vadd.f32 %v5937_v1, %v4720_v9 }
 0x4b9   :  { %v4860_v11 = vadd.f32 %v5972_v4, %v4790_v10 }
 0x4bb   :  { %v4930_v13 = vadd.f32 %v6007_v7, %v4860_v11 }
 0x4bd   :  { %v4935_v14 = vadd.f32 %v4934_v12, %v4930_v13 }
 0x4bf   :  { %v4936_v15 = vsub.f32 0.0, %v4935_v14 }
 0x4c1   :  { %v4937_v17 = vmul.f32 1.442695, %v4936_v15 }
 0x4c3   :  { %6554 = vpow2.f32 %v4937_v17 }
 0x4cd   :  { %v6555_v18 = vpop.eup %6554 }
 0x4ce   :  { %v4939_v19 = vadd.f32 1.0, %v6555_v18 }
 0x4d0   :  { %6556 = vrcp.f32 %v4939_v19 }
 0x4da   :  { %v6557_v20 = vpop.eup %6556 }
 0x4db   :  { %4943 = vst.msk [vmem:[%s8253_s7] sm:$0xf] %vm4942_vm6, %v6557_v20 }

</bundles_post_ra>
